<compile_context>
chip_gen: v7x
topology: tpu7x:2x2x1
jax: 0.10.0
libtpu: 0.0.40
codegen_flags: <defaults>
</compile_context>

<pallas_src>
import functools

import jax
import jax.numpy as jnp
from jax.experimental import pallas as pl
from jax.experimental.pallas import tpu as pltpu

LANE = 128      # lane width: pad every feature axis to a multiple of this
TILE_B = 128    # batch rows per grid step (multiple of 8 f32 sublanes, full MXU tile)


def _round_up(n, m):
    return ((n + m - 1) // m) * m


def _mlp_kernel(x_ref,
                w11, b11, w12, b12, w13, b13, w14, b14,
                w21, b21, w22, b22, w23, b23, w24, b24,
                o_ref):
    """One batch tile: stage_one MLP, residual add, stage_two MLP.

    x_ref : (TILE_B, IN_P)  f32, lane-padded input tile
    w*    : (K_P, N_P)      bf16, zero-padded, VMEM-resident across the grid
    b*    : (1,  N_P)       f32, zero-padded
    o_ref : (TILE_B, OUT_P) f32, lane-dense padded output slab
    """
    x = x_ref[...]                                            # f32

    def lin_relu(h_f32, w_ref, b_ref):
        # bf16 x bf16 -> f32 accumulation on the MXU; bias + relu in f32 on the VPU.
        y = jnp.dot(h_f32.astype(jnp.bfloat16), w_ref[...],
                    preferred_element_type=jnp.float32)
        return jnp.maximum(y + b_ref[...], 0.0)

    # stage_one
    h = x
    for w_ref, b_ref in ((w11, b11), (w12, b12), (w13, b13), (w14, b14)):
        h = lin_relu(h, w_ref, b_ref)

    # residual with the ORIGINAL x, then stage_two
    z = x + h
    for w_ref, b_ref in ((w21, b21), (w22, b22), (w23, b23), (w24, b24)):
        z = lin_relu(z, w_ref, b_ref)

    o_ref[...] = z


def mlp_forward(x, padded_params, *, in_dim, out_dim, tile_b=TILE_B):
    """x: [B, in_dim] f32.  padded_params: dict of lane-padded bf16 weights / f32 biases."""
    B = x.shape[0]
    in_p = padded_params["s1_w0"].shape[0]
    out_p = padded_params["s2_w3"].shape[1]

    # Pad batch up to a whole tile and the feature axis up to the lane width.
    b_pad = _round_up(max(B, 1), tile_b)
    x_p = jnp.zeros((b_pad, in_p), jnp.float32).at[:B, :in_dim].set(x)

    flat_args = [x_p]
    in_specs = [pl.BlockSpec((tile_b, in_p), lambda i: (i, 0))]
    flops = 0
    param_bytes = 0
    for stage in ("s1", "s2"):
        for i in range(4):
            w = padded_params[f"{stage}_w{i}"]
            b = padded_params[f"{stage}_b{i}"]
            flat_args += [w, b]
            # Constant index maps -> weights/biases stay resident in VMEM.
            in_specs += [pl.BlockSpec(w.shape, lambda i: (0, 0)),
                         pl.BlockSpec(b.shape, lambda i: (0, 0))]
            flops += 2 * b_pad * w.shape[0] * w.shape[1]
            param_bytes += w.size * w.dtype.itemsize + b.size * b.dtype.itemsize

    cost = pl.CostEstimate(
        flops=flops,
        transcendentals=0,
        bytes_accessed=x_p.size * 4 + param_bytes + b_pad * out_p * 4)

    out = pl.pallas_call(
        _mlp_kernel,
        out_shape=jax.ShapeDtypeStruct((b_pad, out_p), jnp.float32),
        grid=(b_pad // tile_b,),
        in_specs=in_specs,
        out_specs=pl.BlockSpec((tile_b, out_p), lambda i: (i, 0)),
        compiler_params=pltpu.CompilerParams(
            dimension_semantics=("parallel",),
            vmem_limit_bytes=32 * 1024 * 1024),
        cost_estimate=cost,
    )(*flat_args)

    return out[:B, :out_dim]


def init_params(key, in_dim, width, out_dim):
    """nn.Linear-style init (uniform +-1/sqrt(fan_in)); weights stored transposed [in, out]."""
    dims_s1 = [(in_dim, width), (width, width), (width, width), (width, in_dim)]
    dims_s2 = [(in_dim, width), (width, width), (width, width), (width, out_dim)]
    params = {}
    for stage, dims in (("s1", dims_s1), ("s2", dims_s2)):
        for i, (fan_in, fan_out) in enumerate(dims):
            key, kw, kb = jax.random.split(key, 3)
            bound = 1.0 / (fan_in ** 0.5)
            params[f"{stage}_w{i}"] = jax.random.uniform(
                kw, (fan_in, fan_out), jnp.float32, -bound, bound)
            params[f"{stage}_b{i}"] = jax.random.uniform(
                kb, (1, fan_out), jnp.float32, -bound, bound)
    return params


def pad_params(params):
    """Zero-pad feature dims to the 128-lane width; weights cast to bf16 for the MXU."""
    padded = {}
    for name, v in params.items():
        if "_w" in name:
            k, n = v.shape
            kp, npad = _round_up(k, LANE), _round_up(n, LANE)
            w = jnp.zeros((kp, npad), jnp.float32).at[:k, :n].set(v)
            padded[name] = w.astype(jnp.bfloat16)
        else:
            n = v.shape[1]
            npad = _round_up(n, LANE)
            padded[name] = jnp.zeros((1, npad), jnp.float32).at[:, :n].set(v)
    return padded


def mlp_reference(x, params):
    """bf16-matmul / f32-accumulate reference (same numerics as the kernel)."""
    def lin(h, w, b):
        y = jnp.dot(h.astype(jnp.bfloat16), w.astype(jnp.bfloat16),
                    preferred_element_type=jnp.float32) + b
        return jnp.maximum(y, 0.0)
    h = x
    for i in range(4):
        h = lin(h, params[f"s1_w{i}"], params[f"s1_b{i}"])
    z = x + h
    for i in range(4):
        z = lin(z, params[f"s2_w{i}"], params[f"s2_b{i}"])
    return z


if __name__ == "__main__":
    # Module defaults: in_dim = 128 + 3, width = 256, out_dim = 1, depth = 4.
    # Batch deliberately not a multiple of TILE_B to exercise batch padding.
    B, IN_DIM, WIDTH, OUT_DIM = 200, 128 + 3, 256, 1

    key = jax.random.PRNGKey(0)
    key, kx = jax.random.split(key)
    x = jax.random.normal(kx, (B, IN_DIM), jnp.float32)
    params = init_params(key, IN_DIM, WIDTH, OUT_DIM)
    padded = pad_params(params)

    run = jax.jit(functools.partial(mlp_forward, in_dim=IN_DIM, out_dim=OUT_DIM))
    out = jax.block_until_ready(run(x, padded))

    ref = mlp_reference(x, params)
    assert out.shape == (B, OUT_DIM)
    assert jnp.allclose(out, ref, atol=5e-3, rtol=5e-3), "mismatch vs reference"

    print("KERNEL_OK")
</pallas_src>

<mosaic_0001>
module attributes {stable_mosaic.version = 11 : i64} {
  func.func @_mlp_kernel(%arg0: i32, %arg1: memref<128x256xf32, #tpu.memory_space<vmem>>, %arg2: memref<256x256xbf16, #tpu.memory_space<vmem>>, %arg3: memref<1x256xf32, #tpu.memory_space<vmem>>, %arg4: memref<256x256xbf16, #tpu.memory_space<vmem>>, %arg5: memref<1x256xf32, #tpu.memory_space<vmem>>, %arg6: memref<256x256xbf16, #tpu.memory_space<vmem>>, %arg7: memref<1x256xf32, #tpu.memory_space<vmem>>, %arg8: memref<256x256xbf16, #tpu.memory_space<vmem>>, %arg9: memref<1x256xf32, #tpu.memory_space<vmem>>, %arg10: memref<256x256xbf16, #tpu.memory_space<vmem>>, %arg11: memref<1x256xf32, #tpu.memory_space<vmem>>, %arg12: memref<256x256xbf16, #tpu.memory_space<vmem>>, %arg13: memref<1x256xf32, #tpu.memory_space<vmem>>, %arg14: memref<256x256xbf16, #tpu.memory_space<vmem>>, %arg15: memref<1x256xf32, #tpu.memory_space<vmem>>, %arg16: memref<256x128xbf16, #tpu.memory_space<vmem>>, %arg17: memref<1x128xf32, #tpu.memory_space<vmem>>, %arg18: memref<128x128xf32, #tpu.memory_space<vmem>>) attributes {dimension_semantics = [#tpu.dimension_semantics<parallel>], iteration_bounds = array<i64: 2>, scalar_prefetch = 0 : i64, scratch_operands = 0 : i64, tpu.core_type = #tpu.core_type<tc>, window_params = [{transform_indices = @transform_0, window_bounds = array<i64: 128, 256>}, {pipeline_mode = #tpu.pipeline_mode<synchronous>, transform_indices = @transform_1, window_bounds = array<i64: 256, 256>}, {pipeline_mode = #tpu.pipeline_mode<synchronous>, transform_indices = @transform_2, window_bounds = array<i64: 1, 256>}, {pipeline_mode = #tpu.pipeline_mode<synchronous>, transform_indices = @transform_3, window_bounds = array<i64: 256, 256>}, {pipeline_mode = #tpu.pipeline_mode<synchronous>, transform_indices = @transform_4, window_bounds = array<i64: 1, 256>}, {pipeline_mode = #tpu.pipeline_mode<synchronous>, transform_indices = @transform_5, window_bounds = array<i64: 256, 256>}, {pipeline_mode = #tpu.pipeline_mode<synchronous>, transform_indices = @transform_6, window_bounds = array<i64: 1, 256>}, {pipeline_mode = #tpu.pipeline_mode<synchronous>, transform_indices = @transform_7, window_bounds = array<i64: 256, 256>}, {pipeline_mode = #tpu.pipeline_mode<synchronous>, transform_indices = @transform_8, window_bounds = array<i64: 1, 256>}, {pipeline_mode = #tpu.pipeline_mode<synchronous>, transform_indices = @transform_9, window_bounds = array<i64: 256, 256>}, {pipeline_mode = #tpu.pipeline_mode<synchronous>, transform_indices = @transform_10, window_bounds = array<i64: 1, 256>}, {pipeline_mode = #tpu.pipeline_mode<synchronous>, transform_indices = @transform_11, window_bounds = array<i64: 256, 256>}, {pipeline_mode = #tpu.pipeline_mode<synchronous>, transform_indices = @transform_12, window_bounds = array<i64: 1, 256>}, {pipeline_mode = #tpu.pipeline_mode<synchronous>, transform_indices = @transform_13, window_bounds = array<i64: 256, 256>}, {pipeline_mode = #tpu.pipeline_mode<synchronous>, transform_indices = @transform_14, window_bounds = array<i64: 1, 256>}, {pipeline_mode = #tpu.pipeline_mode<synchronous>, transform_indices = @transform_15, window_bounds = array<i64: 256, 128>}, {pipeline_mode = #tpu.pipeline_mode<synchronous>, transform_indices = @transform_16, window_bounds = array<i64: 1, 128>}, {transform_indices = @transform_17, window_bounds = array<i64: 128, 128>}]} {
    %c0 = arith.constant 0 : index
    %c0_0 = arith.constant 0 : index
    %0 = vector.load %arg1[%c0, %c0_0] : memref<128x256xf32, #tpu.memory_space<vmem>>, vector<128x256xf32>
    %1 = arith.truncf %0 : vector<128x256xf32> to vector<128x256xbf16>
    %c0_1 = arith.constant 0 : index
    %c0_2 = arith.constant 0 : index
    %2 = vector.load %arg2[%c0_1, %c0_2] : memref<256x256xbf16, #tpu.memory_space<vmem>>, vector<256x256xbf16>
    %cst = arith.constant dense<0.000000e+00> : vector<128x256xf32>
    %3 = tpu.matmul %1, %2, %cst {dimension_numbers = #tpu.dot_dimension_numbers<[1], [0], [0], [1], [0, 0, 1, 1], [], []>} : vector<128x256xbf16>, vector<256x256xbf16>, vector<128x256xf32> -> vector<128x256xf32>
    %c0_3 = arith.constant 0 : index
    %c0_4 = arith.constant 0 : index
    %4 = vector.load %arg3[%c0_3, %c0_4] : memref<1x256xf32, #tpu.memory_space<vmem>>, vector<1x256xf32>
    %5 = vector.broadcast %4 : vector<1x256xf32> to vector<128x256xf32>
    %6 = arith.addf %3, %5 : vector<128x256xf32>
    %cst_5 = arith.constant 0.000000e+00 : f32
    %7 = vector.broadcast %cst_5 : f32 to vector<128x256xf32>
    %8 = arith.maximumf %6, %7 : vector<128x256xf32>
    %9 = arith.truncf %8 : vector<128x256xf32> to vector<128x256xbf16>
    %c0_6 = arith.constant 0 : index
    %c0_7 = arith.constant 0 : index
    %10 = vector.load %arg4[%c0_6, %c0_7] : memref<256x256xbf16, #tpu.memory_space<vmem>>, vector<256x256xbf16>
    %cst_8 = arith.constant dense<0.000000e+00> : vector<128x256xf32>
    %11 = tpu.matmul %9, %10, %cst_8 {dimension_numbers = #tpu.dot_dimension_numbers<[1], [0], [0], [1], [0, 0, 1, 1], [], []>} : vector<128x256xbf16>, vector<256x256xbf16>, vector<128x256xf32> -> vector<128x256xf32>
    %c0_9 = arith.constant 0 : index
    %c0_10 = arith.constant 0 : index
    %12 = vector.load %arg5[%c0_9, %c0_10] : memref<1x256xf32, #tpu.memory_space<vmem>>, vector<1x256xf32>
    %13 = vector.broadcast %12 : vector<1x256xf32> to vector<128x256xf32>
    %14 = arith.addf %11, %13 : vector<128x256xf32>
    %cst_11 = arith.constant 0.000000e+00 : f32
    %15 = vector.broadcast %cst_11 : f32 to vector<128x256xf32>
    %16 = arith.maximumf %14, %15 : vector<128x256xf32>
    %17 = arith.truncf %16 : vector<128x256xf32> to vector<128x256xbf16>
    %c0_12 = arith.constant 0 : index
    %c0_13 = arith.constant 0 : index
    %18 = vector.load %arg6[%c0_12, %c0_13] : memref<256x256xbf16, #tpu.memory_space<vmem>>, vector<256x256xbf16>
    %cst_14 = arith.constant dense<0.000000e+00> : vector<128x256xf32>
    %19 = tpu.matmul %17, %18, %cst_14 {dimension_numbers = #tpu.dot_dimension_numbers<[1], [0], [0], [1], [0, 0, 1, 1], [], []>} : vector<128x256xbf16>, vector<256x256xbf16>, vector<128x256xf32> -> vector<128x256xf32>
    %c0_15 = arith.constant 0 : index
    %c0_16 = arith.constant 0 : index
    %20 = vector.load %arg7[%c0_15, %c0_16] : memref<1x256xf32, #tpu.memory_space<vmem>>, vector<1x256xf32>
    %21 = vector.broadcast %20 : vector<1x256xf32> to vector<128x256xf32>
    %22 = arith.addf %19, %21 : vector<128x256xf32>
    %cst_17 = arith.constant 0.000000e+00 : f32
    %23 = vector.broadcast %cst_17 : f32 to vector<128x256xf32>
    %24 = arith.maximumf %22, %23 : vector<128x256xf32>
    %25 = arith.truncf %24 : vector<128x256xf32> to vector<128x256xbf16>
    %c0_18 = arith.constant 0 : index
    %c0_19 = arith.constant 0 : index
    %26 = vector.load %arg8[%c0_18, %c0_19] : memref<256x256xbf16, #tpu.memory_space<vmem>>, vector<256x256xbf16>
    %cst_20 = arith.constant dense<0.000000e+00> : vector<128x256xf32>
    %27 = tpu.matmul %25, %26, %cst_20 {dimension_numbers = #tpu.dot_dimension_numbers<[1], [0], [0], [1], [0, 0, 1, 1], [], []>} : vector<128x256xbf16>, vector<256x256xbf16>, vector<128x256xf32> -> vector<128x256xf32>
    %c0_21 = arith.constant 0 : index
    %c0_22 = arith.constant 0 : index
    %28 = vector.load %arg9[%c0_21, %c0_22] : memref<1x256xf32, #tpu.memory_space<vmem>>, vector<1x256xf32>
    %29 = vector.broadcast %28 : vector<1x256xf32> to vector<128x256xf32>
    %30 = arith.addf %27, %29 : vector<128x256xf32>
    %cst_23 = arith.constant 0.000000e+00 : f32
    %31 = vector.broadcast %cst_23 : f32 to vector<128x256xf32>
    %32 = arith.maximumf %30, %31 : vector<128x256xf32>
    %33 = arith.addf %0, %32 : vector<128x256xf32>
    %34 = arith.truncf %33 : vector<128x256xf32> to vector<128x256xbf16>
    %c0_24 = arith.constant 0 : index
    %c0_25 = arith.constant 0 : index
    %35 = vector.load %arg10[%c0_24, %c0_25] : memref<256x256xbf16, #tpu.memory_space<vmem>>, vector<256x256xbf16>
    %cst_26 = arith.constant dense<0.000000e+00> : vector<128x256xf32>
    %36 = tpu.matmul %34, %35, %cst_26 {dimension_numbers = #tpu.dot_dimension_numbers<[1], [0], [0], [1], [0, 0, 1, 1], [], []>} : vector<128x256xbf16>, vector<256x256xbf16>, vector<128x256xf32> -> vector<128x256xf32>
    %c0_27 = arith.constant 0 : index
    %c0_28 = arith.constant 0 : index
    %37 = vector.load %arg11[%c0_27, %c0_28] : memref<1x256xf32, #tpu.memory_space<vmem>>, vector<1x256xf32>
    %38 = vector.broadcast %37 : vector<1x256xf32> to vector<128x256xf32>
    %39 = arith.addf %36, %38 : vector<128x256xf32>
    %cst_29 = arith.constant 0.000000e+00 : f32
    %40 = vector.broadcast %cst_29 : f32 to vector<128x256xf32>
    %41 = arith.maximumf %39, %40 : vector<128x256xf32>
    %42 = arith.truncf %41 : vector<128x256xf32> to vector<128x256xbf16>
    %c0_30 = arith.constant 0 : index
    %c0_31 = arith.constant 0 : index
    %43 = vector.load %arg12[%c0_30, %c0_31] : memref<256x256xbf16, #tpu.memory_space<vmem>>, vector<256x256xbf16>
    %cst_32 = arith.constant dense<0.000000e+00> : vector<128x256xf32>
    %44 = tpu.matmul %42, %43, %cst_32 {dimension_numbers = #tpu.dot_dimension_numbers<[1], [0], [0], [1], [0, 0, 1, 1], [], []>} : vector<128x256xbf16>, vector<256x256xbf16>, vector<128x256xf32> -> vector<128x256xf32>
    %c0_33 = arith.constant 0 : index
    %c0_34 = arith.constant 0 : index
    %45 = vector.load %arg13[%c0_33, %c0_34] : memref<1x256xf32, #tpu.memory_space<vmem>>, vector<1x256xf32>
    %46 = vector.broadcast %45 : vector<1x256xf32> to vector<128x256xf32>
    %47 = arith.addf %44, %46 : vector<128x256xf32>
    %cst_35 = arith.constant 0.000000e+00 : f32
    %48 = vector.broadcast %cst_35 : f32 to vector<128x256xf32>
    %49 = arith.maximumf %47, %48 : vector<128x256xf32>
    %50 = arith.truncf %49 : vector<128x256xf32> to vector<128x256xbf16>
    %c0_36 = arith.constant 0 : index
    %c0_37 = arith.constant 0 : index
    %51 = vector.load %arg14[%c0_36, %c0_37] : memref<256x256xbf16, #tpu.memory_space<vmem>>, vector<256x256xbf16>
    %cst_38 = arith.constant dense<0.000000e+00> : vector<128x256xf32>
    %52 = tpu.matmul %50, %51, %cst_38 {dimension_numbers = #tpu.dot_dimension_numbers<[1], [0], [0], [1], [0, 0, 1, 1], [], []>} : vector<128x256xbf16>, vector<256x256xbf16>, vector<128x256xf32> -> vector<128x256xf32>
    %c0_39 = arith.constant 0 : index
    %c0_40 = arith.constant 0 : index
    %53 = vector.load %arg15[%c0_39, %c0_40] : memref<1x256xf32, #tpu.memory_space<vmem>>, vector<1x256xf32>
    %54 = vector.broadcast %53 : vector<1x256xf32> to vector<128x256xf32>
    %55 = arith.addf %52, %54 : vector<128x256xf32>
    %cst_41 = arith.constant 0.000000e+00 : f32
    %56 = vector.broadcast %cst_41 : f32 to vector<128x256xf32>
    %57 = arith.maximumf %55, %56 : vector<128x256xf32>
    %58 = arith.truncf %57 : vector<128x256xf32> to vector<128x256xbf16>
    %c0_42 = arith.constant 0 : index
    %c0_43 = arith.constant 0 : index
    %59 = vector.load %arg16[%c0_42, %c0_43] : memref<256x128xbf16, #tpu.memory_space<vmem>>, vector<256x128xbf16>
    %cst_44 = arith.constant dense<0.000000e+00> : vector<128x128xf32>
    %60 = tpu.matmul %58, %59, %cst_44 {dimension_numbers = #tpu.dot_dimension_numbers<[1], [0], [0], [1], [0, 0, 1, 1], [], []>} : vector<128x256xbf16>, vector<256x128xbf16>, vector<128x128xf32> -> vector<128x128xf32>
    %c0_45 = arith.constant 0 : index
    %c0_46 = arith.constant 0 : index
    %61 = vector.load %arg17[%c0_45, %c0_46] : memref<1x128xf32, #tpu.memory_space<vmem>>, vector<1x128xf32>
    %62 = vector.broadcast %61 : vector<1x128xf32> to vector<128x128xf32>
    %63 = arith.addf %60, %62 : vector<128x128xf32>
    %cst_47 = arith.constant 0.000000e+00 : f32
    %64 = vector.broadcast %cst_47 : f32 to vector<128x128xf32>
    %65 = arith.maximumf %63, %64 : vector<128x128xf32>
    %c0_48 = arith.constant 0 : index
    %c0_49 = arith.constant 0 : index
    %66 = vector.load %arg18[%c0_48, %c0_49] : memref<128x128xf32, #tpu.memory_space<vmem>>, vector<128x128xf32>
    tpu.vector_store %arg18[%c0_48, %c0_49], %65 {strides = array<i32>} : memref<128x128xf32, #tpu.memory_space<vmem>>, vector<128x128xf32>,
    return
  }
  func.func @transform_0(%arg0: i32) -> (i32, i32) {
    %c0_i32 = arith.constant 0 : i32
    %c0_i32_0 = arith.constant 0 : i32
    return %arg0, %c0_i32 : i32, i32
  }
  func.func @transform_1(%arg0: i32) -> (i32, i32) {
    %c0_i32 = arith.constant 0 : i32
    %c0_i32_0 = arith.constant 0 : i32
    %c0_i32_1 = arith.constant 0 : i32
    return %c0_i32, %c0_i32_0 : i32, i32
  }
  func.func @transform_2(%arg0: i32) -> (i32, i32) {
    %c0_i32 = arith.constant 0 : i32
    %c0_i32_0 = arith.constant 0 : i32
    %c0_i32_1 = arith.constant 0 : i32
    return %c0_i32, %c0_i32_0 : i32, i32
  }
  func.func @transform_3(%arg0: i32) -> (i32, i32) {
    %c0_i32 = arith.constant 0 : i32
    %c0_i32_0 = arith.constant 0 : i32
    %c0_i32_1 = arith.constant 0 : i32
    return %c0_i32, %c0_i32_0 : i32, i32
  }
  func.func @transform_4(%arg0: i32) -> (i32, i32) {
    %c0_i32 = arith.constant 0 : i32
    %c0_i32_0 = arith.constant 0 : i32
    %c0_i32_1 = arith.constant 0 : i32
    return %c0_i32, %c0_i32_0 : i32, i32
  }
  func.func @transform_5(%arg0: i32) -> (i32, i32) {
    %c0_i32 = arith.constant 0 : i32
    %c0_i32_0 = arith.constant 0 : i32
    %c0_i32_1 = arith.constant 0 : i32
    return %c0_i32, %c0_i32_0 : i32, i32
  }
  func.func @transform_6(%arg0: i32) -> (i32, i32) {
    %c0_i32 = arith.constant 0 : i32
    %c0_i32_0 = arith.constant 0 : i32
    %c0_i32_1 = arith.constant 0 : i32
    return %c0_i32, %c0_i32_0 : i32, i32
  }
  func.func @transform_7(%arg0: i32) -> (i32, i32) {
    %c0_i32 = arith.constant 0 : i32
    %c0_i32_0 = arith.constant 0 : i32
    %c0_i32_1 = arith.constant 0 : i32
    return %c0_i32, %c0_i32_0 : i32, i32
  }
  func.func @transform_8(%arg0: i32) -> (i32, i32) {
    %c0_i32 = arith.constant 0 : i32
    %c0_i32_0 = arith.constant 0 : i32
    %c0_i32_1 = arith.constant 0 : i32
    return %c0_i32, %c0_i32_0 : i32, i32
  }
  func.func @transform_9(%arg0: i32) -> (i32, i32) {
    %c0_i32 = arith.constant 0 : i32
    %c0_i32_0 = arith.constant 0 : i32
    %c0_i32_1 = arith.constant 0 : i32
    return %c0_i32, %c0_i32_0 : i32, i32
  }
  func.func @transform_10(%arg0: i32) -> (i32, i32) {
    %c0_i32 = arith.constant 0 : i32
    %c0_i32_0 = arith.constant 0 : i32
    %c0_i32_1 = arith.constant 0 : i32
    return %c0_i32, %c0_i32_0 : i32, i32
  }
  func.func @transform_11(%arg0: i32) -> (i32, i32) {
    %c0_i32 = arith.constant 0 : i32
    %c0_i32_0 = arith.constant 0 : i32
    %c0_i32_1 = arith.constant 0 : i32
    return %c0_i32, %c0_i32_0 : i32, i32
  }
  func.func @transform_12(%arg0: i32) -> (i32, i32) {
    %c0_i32 = arith.constant 0 : i32
    %c0_i32_0 = arith.constant 0 : i32
    %c0_i32_1 = arith.constant 0 : i32
    return %c0_i32, %c0_i32_0 : i32, i32
  }
  func.func @transform_13(%arg0: i32) -> (i32, i32) {
    %c0_i32 = arith.constant 0 : i32
    %c0_i32_0 = arith.constant 0 : i32
    %c0_i32_1 = arith.constant 0 : i32
    return %c0_i32, %c0_i32_0 : i32, i32
  }
  func.func @transform_14(%arg0: i32) -> (i32, i32) {
    %c0_i32 = arith.constant 0 : i32
    %c0_i32_0 = arith.constant 0 : i32
    %c0_i32_1 = arith.constant 0 : i32
    return %c0_i32, %c0_i32_0 : i32, i32
  }
  func.func @transform_15(%arg0: i32) -> (i32, i32) {
    %c0_i32 = arith.constant 0 : i32
    %c0_i32_0 = arith.constant 0 : i32
    %c0_i32_1 = arith.constant 0 : i32
    return %c0_i32, %c0_i32_0 : i32, i32
  }
  func.func @transform_16(%arg0: i32) -> (i32, i32) {
    %c0_i32 = arith.constant 0 : i32
    %c0_i32_0 = arith.constant 0 : i32
    %c0_i32_1 = arith.constant 0 : i32
    return %c0_i32, %c0_i32_0 : i32, i32
  }
  func.func @transform_17(%arg0: i32) -> (i32, i32) {
    %c0_i32 = arith.constant 0 : i32
    %c0_i32_0 = arith.constant 0 : i32
    return %arg0, %c0_i32 : i32, i32
  }
}

</mosaic_0001>

<bundles_post_ra>
// kernel: mlp_forward.1
= control target key start
LH: loop header
LB: loop body
LE: loop exit
PB: predicated region body
PF: predicated region fallthrough
CT: control target
= control target key end

     0   :  { %s5542_s0 = inlined_call_operand.vmem [shape: f32[256,256], index: 0, kind: input, shape index: {}]   ;;  %s5543_s1 = inlined_call_operand.vmem [shape: bf16[256,256], index: 1, kind: input, shape index: {}]   ;;  %s5544_s2 = inlined_call_operand.vmem [shape: f32[1,256], index: 2, kind: input, shape index: {}]   ;;  %s5545_s3 = inlined_call_operand.vmem [shape: bf16[256,256], index: 3, kind: input, shape index: {}]   ;;  %s5546_s4 = inlined_call_operand.vmem [shape: f32[1,256], index: 4, kind: input, shape index: {}]   ;;  %s5547_s5 = inlined_call_operand.vmem [shape: bf16[256,256], index: 5, kind: input, shape index: {}]   ;;  %s5548_s6 = inlined_call_operand.vmem [shape: f32[1,256], index: 6, kind: input, shape index: {}]   ;;  %s5549_s7 = inlined_call_operand.vmem [shape: bf16[256,256], index: 7, kind: input, shape index: {}]   ;;  %s5550_s8 = inlined_call_operand.vmem [shape: f32[1,256], index: 8, kind: input, shape index: {}]   ;;  %s5551_s9 = inlined_call_operand.vmem [shape: bf16[256,256], index: 9, kind: input, shape index: {}]   ;;  %s5552_s10 = inlined_call_operand.vmem [shape: f32[1,256], index: 10, kind: input, shape index: {}]   ;;  %s5553_s11 = inlined_call_operand.vmem [shape: bf16[256,256], index: 11, kind: input, shape index: {}]   ;;  %s5554_s12 = inlined_call_operand.vmem [shape: f32[1,256], index: 12, kind: input, shape index: {}]   ;;  %s5555_s13 = inlined_call_operand.hbm [shape: bf16[256,256], index: 13, kind: input, shape index: {}]   ;;  %s5556_s14 = inlined_call_operand.vmem [shape: f32[1,256], index: 14, kind: input, shape index: {}]   ;;  %s5557_s15 = inlined_call_operand.hbm [shape: bf16[256,128], index: 15, kind: input, shape index: {}]   ;;  %s5558_s16 = inlined_call_operand.vmem [shape: f32[1,128], index: 16, kind: input, shape index: {}]   ;;  %s5559_s17 = inlined_call_operand.vmem [shape: f32[256,128], index: 17, kind: output, shape index: {}]  }
   0x1   :  { %5565 = sst [smem:[#allocation8_spill]] %s5542_s0 }
   0x2   :  { %5566 = sst [smem:[#allocation9_spill]] %s5543_s1 }
   0x3   :  { %5567 = sst [smem:[#allocation10_spill]] %s5558_s16 }
   0x4   :  { %5568 = sst [smem:[#allocation11_spill]] %s5559_s17 }
   0x5   :  { %22 = vsyncpa [#allocation3], 0 }
   0x6   :  { %23 = vsyncpa [#allocation5], 0  ;;  %s4470_s24 = smov 0  }
   0x7 LB: > { %s4374_s25 = smov [#allocation2]   ;;  %s5564_s27 = sadd.s32 4294967295, %s4372_s24   ;;  %s4372_s24 = sphi %s4470_s24, %s29_s24  }
   0x8   : > { %s470_s26 = sshll.u32 %s4374_s25, 4  ;;  %p3565_p0 = scmp.ge.s32.totalorder %s4372_s24, 1  ;;  %s471_s26 = int_to_ptr.vmem [resolvable:$true] %s470_s26 }
   0x9   : > { %p422_p1 = scmp.lt.s32.totalorder %s4372_s24, 3  ;;  %p4484_p3 = scmp.eq.s32.totalorder %s5564_s27, 0 }
   0xa   : > { %s4375_s0 = smov [#allocation4]   ;;  %s4302_s20 = scalar_lea.hbm %s5555_s13, 4096 }
   0xb   : > { %p4478_p2 = pnand %p3565_p0, %p422_p1  ;;  %s486_s30 = sshll.u32 %s4375_s0, 4  ;;  %s4496_s30 = int_to_ptr.vmem [resolvable:$true] %s486_s30 }
   0xc   : > { %s5570_s29 = scalar_select %p4484_p3, 1, 0 }
   0xd   : > { %s5569_s28 = scalar_select %p4478_p2, 1, 0 }
   0xe   : > { %p3893_p4 = pneg %p4478_p2  ;;  %p4303_p6 = scmp.ne.s32.totalorder %s5555_s13, %s4302_s20 }
   0xf   : > { %p4309_p10 = scmp.lt.u32.totalorder %s4302_s20, %s5555_s13 }
  0x10   : > { %p4492_p5 = pnand %p4484_p3, %p3893_p4 }
  0x12   : > { %p4304_p7 = pneg %p4492_p5 }
  0x14   : > { %p4305_p8 = pnand %p4304_p7, %p4303_p6 }
  0x16   : > { %p4306_p9 = pneg %p4305_p8 }
  0x18   : > { %p4311_p11 = pnand %p4309_p10, %p4306_p9 }
  0x1a   : > { %4314 = shalt.err (!%p4311_p11)
}
  0x1b   : > { %s4315_s0 = scalar_lea.vmem %s471_s26, 4096  ;;  %p4323_p1 = scmp.lt.s32.totalorder %s471_s26, %s471_s26 }
  0x1c   : > { %p4316_p12 = scmp.ne.s32.totalorder %s471_s26, %s4315_s0  ;;  %p4324_p4 = scmp.lt.s32.totalorder %s4315_s0, %s4315_s0 }
  0x1e   : > { %p4318_p13 = pnand %p4316_p12, %p4304_p7  ;;  %p4325_p3 = por %p4324_p4, %p4323_p1 }
  0x20   : > { %p4319_p0 = pneg %p4318_p13 }
  0x22   : > { %p4326_p2 = pnand %p4325_p3, %p4319_p0 }
  0x24   : > { %4329 = shalt.err (!%p4326_p2)
}
  0x25   : > { %s4376_s19 = smov 128   ;;  %s4377_s1 = smov 8  }
  0x26   : > { %3896 = dma.hbm_to_vmem [thread:$0]  (!%p4492_p5), %s5555_s13, 4096, %s471_s26, [#allocation3], %s4376_s19, %s4376_s19, %s4377_s1  }
  0x27   : > { %s4330_s25 = scalar_lea.hbm %s5557_s15, 2048 }
  0x28   : > { %p4331_p6 = scmp.ne.s32.totalorder %s5557_s15, %s4330_s25  ;;  %p4337_p8 = scmp.lt.u32.totalorder %s4330_s25, %s5557_s15 }
  0x2a   : > { %p4333_p2 = pnand %p4331_p6, %p4304_p7 }
  0x2c   : > { %p4334_p3 = pneg %p4333_p2 }
  0x2e   : > { %p4339_p9 = pnand %p4337_p8, %p4334_p3 }
  0x30   : > { %4342 = shalt.err (!%p4339_p9)
}
  0x31   : > { %s4343_s26 = scalar_lea.vmem %s4496_s30, 2048  ;;  %p4351_p13 = scmp.lt.s32.totalorder %s4496_s30, %s4496_s30 }
  0x32   : > { %p4344_p10 = scmp.ne.s32.totalorder %s4496_s30, %s4343_s26  ;;  %p4352_p0 = scmp.lt.s32.totalorder %s4343_s26, %s4343_s26 }
  0x34   : > { %p4346_p11 = pnand %p4344_p10, %p4304_p7  ;;  %p4353_p1 = por %p4352_p0, %p4351_p13 }
  0x36   : > { %p4347_p12 = pneg %p4346_p11 }
  0x38   : > { %p4354_p4 = pnand %p4353_p1, %p4347_p12 }
  0x3a   : > { %4357 = shalt.err (!%p4354_p4)
}
  0x3b   : > { %s4378_s16 = smov 64   ;;  %s4379_s17 = smov 4  }
  0x3c   : > { %3899 = dma.hbm_to_vmem [thread:$0]  (!%p4492_p5), %s5557_s15, 2048, %s4496_s30, [#allocation5], %s4378_s16, %s4378_s16, %s4379_s17  }
  0x3d   : > { %p5572_p6 = scmp.ne.s32.totalorder %s5569_s28, 0 }
  0x3e   : > { %p5573_p7 = scmp.ne.s32.totalorder (!%p5572_p6), %s5570_s29, 0 }
  0x3f   : > { %515 = sbr.rel (%p5572_p6) target bundleno = 1978 (0x7ba), region = 88 }
  0x46   : > { %4363 = dma.done.wait (%p5573_p7), [#allocation3], 4096  }
  0x47   : > { %4365 = vsyncadd (%p5573_p7), [#allocation3], 4294963200 }
  0x48   : > { %4367 = dma.done.wait (%p5573_p7), [#allocation5], 2048  }
  0x49   : > { %4369 = vsyncadd (%p5573_p7), [#allocation5], 4294965248  ;;  %s5574_s20 = sld [smem:[#allocation9_spill]]  ;;  %s5575_s26 = sadd.s32 4294967295, %s4372_s24   ;;  %v3966_v22 = vld [vmem:[%s5545_s3 + $0x4] ss:$8 sps:$4 sm:$0xff]  }
  0x4a   : > { %s3572_s16 = sshll.u32 %s5575_s26, 4  ;;  %s5576_s27 = sld [smem:[#allocation8_spill]]  ;;  %v3968_v23 = vld [vmem:[%s5545_s3] ss:$8 sps:$4 sm:$0xff]   ;;  %1203 = vmatprep.subr.bf16.mxu1 %v3966_v22  ;;  %v3969_v25 = vld [vmem:[%s5545_s3 + $0x14] ss:$8 sps:$4 sm:$0xff]  }
  0x4b   : > { %p573_p5 = scmp.lt.s32.totalorder %s3572_s16, 31  ;;  %1204 = vmatpush1.bf16.msra.mxu1 %v3968_v23  ;;  %v3971_v27 = vld [vmem:[%s5545_s3 + $0x10] ss:$8 sps:$4 sm:$0xff]   ;;  %v3972_v28 = vld [vmem:[%s5545_s3 + $0x24] ss:$8 sps:$4 sm:$0xff]   ;;  %s5577_s18 = sld [smem:[#allocation10_spill]] }
  0x4c   : > { %1205 = vmatprep.subr.bf16.mxu1 %v3969_v25  ;;  %v3974_v31 = vld [vmem:[%s5545_s3 + $0x20] ss:$8 sps:$4 sm:$0xff]   ;;  %v3975_v32 = vld [vmem:[%s5545_s3 + $0x34] ss:$8 sps:$4 sm:$0xff]   ;;  %v3977_v35 = vld [vmem:[%s5545_s3 + $0x30] ss:$8 sps:$4 sm:$0xff]  }
  0x4d   : > { %s5580_s16 = smov (!%p573_p5, %s3572_s16), 31  ;;  %v3978_v36 = vld [vmem:[%s5545_s3 + $0x44] ss:$8 sps:$4 sm:$0xff]   ;;  %v3980_v39 = vld [vmem:[%s5545_s3 + $0x40] ss:$8 sps:$4 sm:$0xff]  }
  0x4e   : > { %s3820_s25 = sshll.u32 %s5580_s16, 4  ;;  %v3981_v40 = vld [vmem:[%s5545_s3 + $0x54] ss:$8 sps:$4 sm:$0xff]   ;;  %v3983_v43 = vld [vmem:[%s5545_s3 + $0x50] ss:$8 sps:$4 sm:$0xff]   ;;  %s3576_s1 = sshll.u32 %s5580_s16, 3 }
  0x4f   : > { %v3918_v0 = vld [vmem:[%s5574_s20 + $0x4] ss:$8 sps:$4 sm:$0xff]   ;;  %v3920_v1 = vld [vmem:[%s5574_s20] ss:$8 sps:$4 sm:$0xff]   ;;  %v3921_v2 = vld [vmem:[%s5574_s20 + $0x14] ss:$8 sps:$4 sm:$0xff]   ;;  %1206 = vmatpush1.bf16.msra.mxu1 %v3971_v27 }
  0x50   : > { %838 = vmatprep.subr.bf16.mxu0 %v3918_v0  ;;  %v3923_v3 = vld [vmem:[%s5574_s20 + $0x10] ss:$8 sps:$4 sm:$0xff]   ;;  %v3924_v4 = vld [vmem:[%s5574_s20 + $0x24] ss:$8 sps:$4 sm:$0xff]   ;;  %v3926_v5 = vld [vmem:[%s5574_s20 + $0x20] ss:$8 sps:$4 sm:$0xff]   ;;  %s4596_s19 = scalar_lea.vmem %s5576_s27, %s3820_s25  ;;  %1207 = vmatprep.subr.bf16.mxu1 %v3972_v28 }
  0x51   : > { %839 = vmatpush1.bf16.msra.mxu0 %v3920_v1  ;;  %v3927_v6 = vld [vmem:[%s5574_s20 + $0x34] ss:$8 sps:$4 sm:$0xff]   ;;  %v3929_v7 = vld [vmem:[%s5574_s20 + $0x30] ss:$8 sps:$4 sm:$0xff]   ;;  %v3930_v8 = vld [vmem:[%s5574_s20 + $0x44] ss:$8 sps:$4 sm:$0xff]  }
  0x52   : > { %840 = vmatprep.subr.bf16.mxu0 %v3921_v2  ;;  %v3932_v9 = vld [vmem:[%s5574_s20 + $0x40] ss:$8 sps:$4 sm:$0xff]   ;;  %v3933_v10 = vld [vmem:[%s5574_s20 + $0x54] ss:$8 sps:$4 sm:$0xff]   ;;  %v3935_v11 = vld [vmem:[%s5574_s20 + $0x50] ss:$8 sps:$4 sm:$0xff]  }
  0x53   : > { %v3936_v12 = vld [vmem:[%s5574_s20 + $0x64] ss:$8 sps:$4 sm:$0xff]   ;;  %v589_v14 = vld [vmem:[%s4596_s19 + $0x18] sm:$0xff]  ;;  %v3938_v16 = vld [vmem:[%s5574_s20 + $0x60] ss:$8 sps:$4 sm:$0xff]   ;;  %1208 = vmatpush1.bf16.msra.mxu1 %v3974_v31 }
  0x54   : > { %v587_v13 = vld [vmem:[%s4596_s19 + $0x8] sm:$0xff]  ;;  %v3939_v17 = vld [vmem:[%s5574_s20 + $0x74] ss:$8 sps:$4 sm:$0xff]   ;;  %v3941_v18 = vld [vmem:[%s5574_s20 + $0x70] ss:$8 sps:$4 sm:$0xff]   ;;  %1209 = vmatprep.subr.bf16.mxu1 %v3975_v32 }
  0x55   : > { %841 = vmatpush1.bf16.msra.mxu0 %v3923_v3  ;;  %v619_v15 = vpack.c.bf16 %v589_v14, %v587_v13  ;;  %v3942_v19 = vld [vmem:[%s5574_s20 + $0x84] ss:$8 sps:$4 sm:$0xff]   ;;  %v3944_v20 = vld [vmem:[%s5574_s20 + $0x80] ss:$8 sps:$4 sm:$0xff]   ;;  %v3945_v21 = vld [vmem:[%s5574_s20 + $0x94] ss:$8 sps:$4 sm:$0xff]  }
  0x56   : > { %842 = vmatprep.subr.bf16.mxu0 %v3924_v4  ;;  %v3947_v24 = vld [vmem:[%s5574_s20 + $0x90] ss:$8 sps:$4 sm:$0xff]   ;;  %v3948_v26 = vld [vmem:[%s5574_s20 + $0xa4] ss:$8 sps:$4 sm:$0xff]   ;;  %v3950_v29 = vld [vmem:[%s5574_s20 + $0xa0] ss:$8 sps:$4 sm:$0xff]  }
  0x57   : > { %870 = vmatprep.mubr.bf16.mxu0 %v619_v15  ;;  %v3951_v30 = vld [vmem:[%s5574_s20 + $0xb4] ss:$8 sps:$4 sm:$0xff]   ;;  %v3953_v33 = vld [vmem:[%s5574_s20 + $0xb0] ss:$8 sps:$4 sm:$0xff]   ;;  %v3954_v34 = vld [vmem:[%s5574_s20 + $0xc4] ss:$8 sps:$4 sm:$0xff]   ;;  %1210 = vmatpush1.bf16.msra.mxu1 %v3977_v35 }
  0x58   : > { %v3956_v37 = vld [vmem:[%s5574_s20 + $0xc0] ss:$8 sps:$4 sm:$0xff]   ;;  %v3957_v38 = vld [vmem:[%s5574_s20 + $0xd4] ss:$8 sps:$4 sm:$0xff]   ;;  %1211 = vmatprep.subr.bf16.mxu1 %v3978_v36  ;;  %v3959_v41 = vld [vmem:[%s5574_s20 + $0xd0] ss:$8 sps:$4 sm:$0xff]  }
  0x59   : > { %843 = vmatpush1.bf16.msra.mxu0 %v3926_v5  ;;  %v3960_v42 = vld [vmem:[%s5574_s20 + $0xe4] ss:$8 sps:$4 sm:$0xff]   ;;  %v3962_v45 = vld [vmem:[%s5574_s20 + $0xe0] ss:$8 sps:$4 sm:$0xff]   ;;  %v3963_v47 = vld [vmem:[%s5574_s20 + $0xf4] ss:$8 sps:$4 sm:$0xff]  }
  0x5a   : > { %844 = vmatprep.subr.bf16.mxu0 %v3927_v6  ;;  %v3984_v44 = vld [vmem:[%s5545_s3 + $0x64] ss:$8 sps:$4 sm:$0xff]   ;;  %v3986_v46 = vld [vmem:[%s5545_s3 + $0x60] ss:$8 sps:$4 sm:$0xff]   ;;  %v3987_v48 = vld [vmem:[%s5545_s3 + $0x74] ss:$8 sps:$4 sm:$0xff]  }
  0x5b   : > { %1212 = vmatpush1.bf16.msra.mxu1 %v3980_v39  ;;  %v3965_v49 = vld [vmem:[%s5574_s20 + $0xf0] ss:$8 sps:$4 sm:$0xff]   ;;  %v586_v50 = vld [vmem:[%s4596_s19] sm:$0xff]  ;;  %v591_v53 = vld [vmem:[%s4596_s19 + $0x28] sm:$0xff] }
  0x5c   : > { %1213 = vmatprep.subr.bf16.mxu1 %v3981_v40  ;;  %v588_v51 = vld [vmem:[%s4596_s19 + $0x10] sm:$0xff]  ;;  %v593_v54 = vld [vmem:[%s4596_s19 + $0x38] sm:$0xff]  ;;  %v3990_v55 = vld [vmem:[%s5545_s3 + $0x84] ss:$8 sps:$4 sm:$0xff]  }
  0x5d   : > { %845 = vmatpush1.bf16.msra.mxu0 %v3929_v7  ;;  %v3989_v52 = vld [vmem:[%s5545_s3 + $0x70] ss:$8 sps:$4 sm:$0xff]   ;;  %v3992_v56 = vld [vmem:[%s5545_s3 + $0x80] ss:$8 sps:$4 sm:$0xff]   ;;  %v618_v57 = vpack.c.bf16 %v588_v51, %v586_v50  ;;  %v3993_v58 = vld [vmem:[%s5545_s3 + $0x94] ss:$8 sps:$4 sm:$0xff]   ;;  %v621_v59 = vpack.c.bf16 %v593_v54, %v591_v53 }
  0x5e   : > { %846 = vmatprep.subr.bf16.mxu0 %v3930_v8  ;;  %v590_v60 = vld [vmem:[%s4596_s19 + $0x20] sm:$0xff]  ;;  %v592_v61 = vld [vmem:[%s4596_s19 + $0x30] sm:$0xff]  ;;  %v595_v63 = vld [vmem:[%s4596_s19 + $0x48] sm:$0xff] }
  0x5f   : > { %1214 = vmatpush1.bf16.msra.mxu1 %v3983_v43  ;;  %v3995_v62 = vld [vmem:[%s5545_s3 + $0x90] ss:$8 sps:$4 sm:$0xff]   ;;  %v3996_v1 = vld [vmem:[%s5545_s3 + $0xa4] ss:$8 sps:$4 sm:$0xff]   ;;  %v3998_v2 = vld [vmem:[%s5545_s3 + $0xa0] ss:$8 sps:$4 sm:$0xff]   ;;  %v620_v3 = vpack.c.bf16 %v592_v61, %v590_v60 }
  0x60   : > { %1215 = vmatprep.subr.bf16.mxu1 %v3984_v44  ;;  %v597_v0 = vld [vmem:[%s4596_s19 + $0x58] sm:$0xff]  ;;  %v594_v6 = vld [vmem:[%s4596_s19 + $0x40] sm:$0xff]  ;;  %v596_v7 = vld [vmem:[%s4596_s19 + $0x50] sm:$0xff] }
  0x61   : > { %847 = vmatpush1.bf16.msra.mxu0 %v3932_v9  ;;  %v3999_v4 = vld [vmem:[%s5545_s3 + $0xb4] ss:$8 sps:$4 sm:$0xff]   ;;  %v623_v5 = vpack.c.bf16 %v597_v0, %v595_v63  ;;  %v4001_v8 = vld [vmem:[%s5545_s3 + $0xb0] ss:$8 sps:$4 sm:$0xff]   ;;  %v599_v9 = vld [vmem:[%s4596_s19 + $0x68] sm:$0xff]  ;;  %v622_v13 = vpack.c.bf16 %v596_v7, %v594_v6 }
  0x62   : > { %848 = vmatprep.subr.bf16.mxu0 %v3933_v10  ;;  %v601_v10 = vld [vmem:[%s4596_s19 + $0x78] sm:$0xff]  ;;  %v602_v22 = vld [vmem:[%s4596_s19 + $0x80] sm:$0xff]  ;;  %v604_v23 = vld [vmem:[%s4596_s19 + $0x90] sm:$0xff] }
  0x63   : > { %1216 = vmatpush1.bf16.msra.mxu1 %v3986_v46  ;;  %v4005_v14 = vld [vmem:[%s5545_s3 + $0xd4] ss:$8 sps:$4 sm:$0xff]   ;;  %v625_v15 = vpack.c.bf16 %v601_v10, %v599_v9  ;;  %v606_v28 = vld [vmem:[%s4596_s19 + $0xa0] sm:$0xff]  ;;  %v615_v36 = vld [vmem:[%s4596_s19 + $0xe8] sm:$0xff]  ;;  %v668_v9 = vlaneseq }
  0x64   : > { %1217 = vmatprep.subr.bf16.mxu1 %v3987_v48  ;;  %v609_v25 = vld [vmem:[%s4596_s19 + $0xb8] sm:$0xff]  ;;  %v612_v35 = vld [vmem:[%s4596_s19 + $0xd0] sm:$0xff]  ;;  %v614_v40 = vld [vmem:[%s4596_s19 + $0xe0] sm:$0xff] }
  0x65   : > { %849 = vmatpush1.bf16.msra.mxu0 %v3935_v11  ;;  %v4002_v11 = vld [vmem:[%s5545_s3 + $0xc4] ss:$8 sps:$4 sm:$0xff]   ;;  %v613_v31 = vld [vmem:[%s4596_s19 + $0xd8] sm:$0xff]  ;;  %v4014_v48 = vld [vmem:[%s5547_s5] ss:$8 sps:$4 sm:$0xff]  }
  0x66   : > { %850 = vmatprep.subr.bf16.mxu0 %v3936_v12  ;;  %v4004_v12 = vld [vmem:[%s5545_s3 + $0xc0] ss:$8 sps:$4 sm:$0xff]   ;;  %v4007_v43 = vld [vmem:[%s5545_s3 + $0xd0] ss:$8 sps:$4 sm:$0xff]   ;;  %v4008_v44 = vld [vmem:[%s5545_s3 + $0xe4] ss:$8 sps:$4 sm:$0xff]  }
  0x67   : > { %1218 = vmatpush1.bf16.msra.mxu1 %v3989_v52  ;;  %v4011_v46 = vld [vmem:[%s5545_s3 + $0xf4] ss:$8 sps:$4 sm:$0xff]   ;;  %v4017_v51 = vld [vmem:[%s5547_s5 + $0x10] ss:$8 sps:$4 sm:$0xff]   ;;  %v4022_v52 = vld [vmem:[%s5547_s5 + $0x24] ss:$8 sps:$4 sm:$0xff]  }
  0x68   : > { %1219 = vmatprep.subr.bf16.mxu1 %v3990_v55  ;;  %v4019_v50 = vld [vmem:[%s5547_s5 + $0x14] ss:$8 sps:$4 sm:$0xff]   ;;  %v4020_v53 = vld [vmem:[%s5547_s5 + $0x20] ss:$8 sps:$4 sm:$0xff]   ;;  %v4023_v55 = vld [vmem:[%s5547_s5 + $0x30] ss:$8 sps:$4 sm:$0xff]  }
  0x69   : > { %851 = vmatpush1.bf16.msra.mxu0 %v3938_v16  ;;  %v598_v16 = vld [vmem:[%s4596_s19 + $0x60] sm:$0xff]  ;;  %v4025_v54 = vld [vmem:[%s5547_s5 + $0x34] ss:$8 sps:$4 sm:$0xff]   ;;  %v4035_v63 = vld [vmem:[%s5547_s5 + $0x70] ss:$8 sps:$4 sm:$0xff]  }
  0x6a   : > { %852 = vmatprep.subr.bf16.mxu0 %v3939_v17  ;;  %v600_v17 = vld [vmem:[%s4596_s19 + $0x70] sm:$0xff]  ;;  %v4034_v60 = vld [vmem:[%s5547_s5 + $0x64] ss:$8 sps:$4 sm:$0xff]   ;;  %v4032_v61 = vld [vmem:[%s5547_s5 + $0x60] ss:$8 sps:$4 sm:$0xff]  }
  0x6b   : > { %1220 = vmatpush1.bf16.msra.mxu1 %v3992_v56  ;;  %v4028_v56 = vld [vmem:[%s5547_s5 + $0x44] ss:$8 sps:$4 sm:$0xff]   ;;  %v4049_v6 = vld [vmem:[%s5547_s5 + $0xb4] ss:$8 sps:$4 sm:$0xff]   ;;  %v4047_v7 = vld [vmem:[%s5547_s5 + $0xb0] ss:$8 sps:$4 sm:$0xff]  }
  0x6c   : > { %1221 = vmatprep.subr.bf16.mxu1 %v3993_v58  ;;  %v4031_v58 = vld [vmem:[%s5547_s5 + $0x54] ss:$8 sps:$4 sm:$0xff]   ;;  %v4040_v0 = vld [vmem:[%s5547_s5 + $0x84] ss:$8 sps:$4 sm:$0xff]   ;;  %v4050_v10 = vld [vmem:[%s5547_s5 + $0xc0] ss:$8 sps:$4 sm:$0xff]  }
  0x6d   : > { %853 = vmatpush1.bf16.msra.mxu0 %v3941_v18  ;;  %v603_v18 = vld [vmem:[%s4596_s19 + $0x88] sm:$0xff] }
  0x6e   : > { %854 = vmatprep.subr.bf16.mxu0 %v3942_v19  ;;  %v605_v19 = vld [vmem:[%s4596_s19 + $0x98] sm:$0xff] }
  0x6f   : > { %1222 = vmatpush1.bf16.msra.mxu1 %v3995_v62  ;;  %v4037_v62 = vld [vmem:[%s5547_s5 + $0x74] ss:$8 sps:$4 sm:$0xff]  }
  0x70   : > { %1223 = vmatprep.subr.bf16.mxu1 %v3996_v1  ;;  %v4038_v1 = vld [vmem:[%s5547_s5 + $0x80] ss:$8 sps:$4 sm:$0xff]  }
  0x71   : > { %855 = vmatpush1.bf16.msra.mxu0 %v3944_v20  ;;  %v624_v20 = vpack.c.bf16 %v600_v17, %v598_v16 }
  0x72   : > { %856 = vmatprep.subr.bf16.mxu0 %v3945_v21  ;;  %v627_v21 = vpack.c.bf16 %v605_v19, %v603_v18 }
  0x73   : > { %1224 = vmatpush1.bf16.msra.mxu1 %v3998_v2  ;;  %v4043_v2 = vld [vmem:[%s5547_s5 + $0x94] ss:$8 sps:$4 sm:$0xff]  }
  0x74   : > { %1225 = vmatprep.subr.bf16.mxu1 %v3999_v4  ;;  %v4046_v4 = vld [vmem:[%s5547_s5 + $0xa4] ss:$8 sps:$4 sm:$0xff]  }
  0x75   : > { %857 = vmatpush1.bf16.msra.mxu0 %v3947_v24  ;;  %v607_v24 = vld [vmem:[%s4596_s19 + $0xa8] sm:$0xff] }
  0x76   : > { %858 = vmatprep.subr.bf16.mxu0 %v3948_v26  ;;  %v626_v26 = vpack.c.bf16 %v604_v23, %v602_v22  ;;  %v629_v27 = vpack.c.bf16 %v609_v25, %v607_v24 }
  0x77   : > { %1226 = vmatpush1.bf16.msra.mxu1 %v4001_v8  ;;  %v4052_v8 = vld [vmem:[%s5547_s5 + $0xc4] ss:$8 sps:$4 sm:$0xff]  }
  0x78   : > { %1227 = vmatprep.subr.bf16.mxu1 %v4002_v11  ;;  %v4055_v11 = vld [vmem:[%s5547_s5 + $0xd4] ss:$8 sps:$4 sm:$0xff]  }
  0x79   : > { %859 = vmatpush1.bf16.msra.mxu0 %v3950_v29  ;;  %v608_v29 = vld [vmem:[%s4596_s19 + $0xb0] sm:$0xff] }
  0x7a   : > { %860 = vmatprep.subr.bf16.mxu0 %v3951_v30  ;;  %v611_v30 = vld [vmem:[%s4596_s19 + $0xc8] sm:$0xff]  ;;  %v628_v32 = vpack.c.bf16 %v608_v29, %v606_v28 }
  0x7b   : > { %1228 = vmatpush1.bf16.msra.mxu1 %v4004_v12  ;;  %v669_v12 = vshrl.u32 %v668_v9, 7 }
  0x7c   : > { %1229 = vmatprep.subr.bf16.mxu1 %v4005_v14 }
  0x7d   : > { %861 = vmatpush1.bf16.msra.mxu0 %v3953_v33  ;;  %v631_v33 = vpack.c.bf16 %v613_v31, %v611_v30  ;;  %v4873_v14 = vsub.s32 0, %v669_v12  ;;  %v4878_v16 = vsub.s32 1, %v669_v12 }
  0x7e   : > { %862 = vmatprep.subr.bf16.mxu0 %v3954_v34  ;;  %v610_v34 = vld [vmem:[%s4596_s19 + $0xc0] sm:$0xff] }
  0x7f   : > { %1230 = vmatpush1.bf16.msra.mxu1 %v4007_v43 }
  0x80   : > { %1231 = vmatprep.subr.bf16.mxu1 %v4008_v44 }
  0x81   : > { %863 = vmatpush1.bf16.msra.mxu0 %v3956_v37  ;;  %v617_v37 = vld [vmem:[%s4596_s19 + $0xf8] sm:$0xff] }
  0x82   : > { %864 = vmatprep.subr.bf16.mxu0 %v3957_v38  ;;  %v630_v38 = vpack.c.bf16 %v612_v35, %v610_v34  ;;  %v633_v39 = vpack.c.bf16 %v617_v37, %v615_v36 }
  0x85   : > { %865 = vmatpush1.bf16.msra.mxu0 %v3959_v41  ;;  %v616_v41 = vld [vmem:[%s4596_s19 + $0xf0] sm:$0xff] }
  0x86   : > { %866 = vmatprep.subr.bf16.mxu0 %v3960_v42  ;;  %v632_v42 = vpack.c.bf16 %v616_v41, %v614_v40 }
  0x89   : > { %867 = vmatpush1.bf16.msra.mxu0 %v3962_v45  ;;  %v4010_v45 = vld [vmem:[%s5545_s3 + $0xe0] ss:$8 sps:$4 sm:$0xff]  }
  0x8a   : > { %868 = vmatprep.subr.bf16.mxu0 %v3963_v47  ;;  %1232 = vmatpush1.bf16.msra.mxu1 %v4010_v45  ;;  %v4013_v47 = vld [vmem:[%s5545_s3 + $0xf0] ss:$8 sps:$4 sm:$0xff]  }
  0x8b   : > { %1233 = vmatprep.subr.bf16.mxu1 %v4011_v46 }
  0x8d   : > { %869 = vmatpush1.bf16.msra.mxu0 %v3965_v49  ;;  %v4016_v49 = vld [vmem:[%s5547_s5 + $0x4] ss:$8 sps:$4 sm:$0xff]  }
  0x8e   : > { %1234 = vmatpush1.bf16.msra.mxu1 %v4013_v47  ;;  %1568 = vmatprep.subr.bf16.mxu0 %v4016_v49 }
  0x90   : > { %871 = vmatmul.mubr.bf16.vlgmr.msra.gmra.mrb[0].mxu0 %v618_v57  ;;  %v4026_v57 = vld [vmem:[%s5547_s5 + $0x40] ss:$8 sps:$4 sm:$0xff]  }
  0x91   : > { %880 = vmatprep.mubr.bf16.mxu0 %v621_v59  ;;  %1569 = vmatpush1.bf16.msra.mxu0 %v4014_v48  ;;  %v4029_v59 = vld [vmem:[%s5547_s5 + $0x50] ss:$8 sps:$4 sm:$0xff]  }
  0x92   : > { %1570 = vmatprep.subr.bf16.mxu0 %v4019_v50 }
  0x95   : > { %1571 = vmatpush1.bf16.msra.mxu0 %v4017_v51 }
  0x96   : > { %1572 = vmatprep.subr.bf16.mxu0 %v4022_v52 }
  0x98   : > { %881 = vmatmul.mubr.bf16.gmra.mrb[4].mxu0 %v620_v3  ;;  %v4041_v3 = vld [vmem:[%s5547_s5 + $0x90] ss:$8 sps:$4 sm:$0xff]  }
  0x99   : > { %890 = vmatprep.mubr.bf16.mxu0 %v623_v5  ;;  %1573 = vmatpush1.bf16.msra.mxu0 %v4020_v53  ;;  %v4044_v5 = vld [vmem:[%s5547_s5 + $0xa0] ss:$8 sps:$4 sm:$0xff]  }
  0x9a   : > { %1574 = vmatprep.subr.bf16.mxu0 %v4025_v54 }
  0x9d   : > { %1575 = vmatpush1.bf16.msra.mxu0 %v4023_v55 }
  0x9e   : > { %1576 = vmatprep.subr.bf16.mxu0 %v4028_v56 }
  0xa0   : > { %891 = vmatmul.mubr.bf16.gmra.mrb[8].mxu0 %v622_v13  ;;  %v4053_v13 = vld [vmem:[%s5547_s5 + $0xd0] ss:$8 sps:$4 sm:$0xff]  }
  0xa1   : > { %900 = vmatprep.mubr.bf16.mxu0 %v625_v15  ;;  %1577 = vmatpush1.bf16.msra.mxu0 %v4026_v57  ;;  %v666_v15 = vld [vmem:[%s5544_s2] sm:$0x3] }
  0xa2   : > { %1578 = vmatprep.subr.bf16.mxu0 %v4031_v58  ;;  %v4881_v17 = vrot.slane %v666_v15, %v4873_v14  ;;  %v4884_v18 = vrot.slane %v666_v15, %v4878_v16 }
  0xa5   : > { %1579 = vmatpush1.bf16.msra.mxu0 %v4029_v59 }
  0xa6   : > { %1580 = vmatprep.subr.bf16.mxu0 %v4034_v60 }
  0xa8   : > { %901 = vmatmul.mubr.bf16.gmra.mrb[12].mxu0 %v624_v20 }
  0xa9   : > { %910 = vmatprep.mubr.bf16.mxu0 %v627_v21  ;;  %1581 = vmatpush1.bf16.msra.mxu0 %v4032_v61 }
  0xaa   : > { %1582 = vmatprep.subr.bf16.mxu0 %v4037_v62 }
  0xad   : > { %1583 = vmatpush1.bf16.msra.mxu0 %v4035_v63 }
  0xae   : > { %1584 = vmatprep.subr.bf16.mxu0 %v4040_v0 }
  0xb0   : > { %911 = vmatmul.mubr.bf16.gmra.mrb[16].mxu0 %v626_v26 }
  0xb1   : > { %920 = vmatprep.mubr.bf16.mxu0 %v629_v27  ;;  %1585 = vmatpush1.bf16.msra.mxu0 %v4038_v1 }
  0xb2   : > { %1586 = vmatprep.subr.bf16.mxu0 %v4043_v2 }
  0xb5   : > { %1587 = vmatpush1.bf16.msra.mxu0 %v4041_v3 }
  0xb6   : > { %1588 = vmatprep.subr.bf16.mxu0 %v4046_v4 }
  0xb8   : > { %921 = vmatmul.mubr.bf16.gmra.mrb[20].mxu0 %v628_v32 }
  0xb9   : > { %930 = vmatprep.mubr.bf16.mxu0 %v631_v33  ;;  %1589 = vmatpush1.bf16.msra.mxu0 %v4044_v5 }
  0xba   : > { %1590 = vmatprep.subr.bf16.mxu0 %v4049_v6 }
  0xbd   : > { %1591 = vmatpush1.bf16.msra.mxu0 %v4047_v7 }
  0xbe   : > { %1592 = vmatprep.subr.bf16.mxu0 %v4052_v8 }
  0xc0   : > { %931 = vmatmul.mubr.bf16.gmra.mrb[24].mxu0 %v630_v38 }
  0xc1   : > { %940 = vmatprep.mubr.bf16.mxu0 %v633_v39  ;;  %1593 = vmatpush1.bf16.msra.mxu0 %v4050_v10 }
  0xc2   : > { %1594 = vmatprep.subr.bf16.mxu0 %v4055_v11 }
  0xc5   : > { %1595 = vmatpush1.bf16.msra.mxu0 %v4053_v13 }
  0xc8   : > { %941 = vmatmul.mubr.bf16.gmra.mrb[28].mxu0 %v632_v42 }
 0x163   : > { %v872_v19 = vpop.f32.mrb[0].mxu0 }
 0x164   : > { %v873_v20 = vadd.f32 %v872_v19, %v4881_v17  ;;  %v874_v21 = vpop.f32.mrb[1].mxu0 }
 0x165   : > { %v875_v22 = vadd.f32 %v874_v21, %v4884_v18  ;;  %v876_v23 = vpop.f32.mrb[2].mxu0 }
 0x166   : > { %v877_v24 = vadd.f32 %v876_v23, %v4881_v17  ;;  %v878_v25 = vpop.f32.mrb[3].mxu0  ;;  %v951_v27 = vmax.f32 %v873_v20, 0.0 }
 0x167   : > { %v879_v26 = vadd.f32 %v878_v25, %v4884_v18  ;;  %v952_v29 = vmax.f32 %v875_v22, 0.0 }
 0x168   : > { %v953_v28 = vmax.f32 %v877_v24, 0.0 }
 0x169   : > { %v954_v30 = vmax.f32 %v879_v26, 0.0 }
 0x16a   : > { %v983_v31 = vpack.c.bf16 %v953_v28, %v951_v27 }
 0x16b   : > { %v882_v32 = vpop.f32.mrb[4].mxu0  ;;  %v984_v33 = vpack.c.bf16 %v954_v30, %v952_v29 }
 0x16c   : > { %v883_v34 = vadd.f32 %v882_v32, %v4881_v17  ;;  %v884_v35 = vpop.f32.mrb[5].mxu0 }
 0x16d   : > { %v885_v36 = vadd.f32 %v884_v35, %v4884_v18  ;;  %v886_v37 = vpop.f32.mrb[6].mxu0  ;;  %1235 = vmatprep.mubr.bf16.mxu1 %v984_v33 }
 0x16e   : > { %v887_v38 = vadd.f32 %v886_v37, %v4881_v17  ;;  %v888_v39 = vpop.f32.mrb[7].mxu0  ;;  %1236 = vmatmul.mubr.bf16.vlgmr.msra.gmra.mrb[0].mxu1 %v983_v31  ;;  %v955_v41 = vmax.f32 %v883_v34, 0.0 }
 0x16f   : > { %v889_v40 = vadd.f32 %v888_v39, %v4884_v18  ;;  %v956_v43 = vmax.f32 %v885_v36, 0.0 }
 0x170   : > { %v957_v42 = vmax.f32 %v887_v38, 0.0 }
 0x171   : > { %v958_v44 = vmax.f32 %v889_v40, 0.0 }
 0x172   : > { %v985_v45 = vpack.c.bf16 %v957_v42, %v955_v41 }
 0x173   : > { %v986_v46 = vpack.c.bf16 %v958_v44, %v956_v43  ;;  %v892_v47 = vpop.f32.mrb[8].mxu0 }
 0x174   : > { %v893_v48 = vadd.f32 %v892_v47, %v4881_v17  ;;  %v894_v49 = vpop.f32.mrb[9].mxu0 }
 0x175   : > { %v895_v50 = vadd.f32 %v894_v49, %v4884_v18  ;;  %v896_v51 = vpop.f32.mrb[10].mxu0  ;;  %1245 = vmatprep.mubr.bf16.mxu1 %v986_v46 }
 0x176   : > { %v897_v52 = vadd.f32 %v896_v51, %v4881_v17  ;;  %v898_v53 = vpop.f32.mrb[11].mxu0  ;;  %1246 = vmatmul.mubr.bf16.gmra.mrb[4].mxu1 %v985_v45  ;;  %v959_v55 = vmax.f32 %v893_v48, 0.0 }
 0x177   : > { %v899_v54 = vadd.f32 %v898_v53, %v4884_v18  ;;  %v960_v57 = vmax.f32 %v895_v50, 0.0 }
 0x178   : > { %v961_v56 = vmax.f32 %v897_v52, 0.0 }
 0x179   : > { %v962_v58 = vmax.f32 %v899_v54, 0.0 }
 0x17a   : > { %v987_v59 = vpack.c.bf16 %v961_v56, %v959_v55 }
 0x17b   : > { %v988_v60 = vpack.c.bf16 %v962_v58, %v960_v57  ;;  %v902_v61 = vpop.f32.mrb[12].mxu0 }
 0x17c   : > { %v903_v62 = vadd.f32 %v902_v61, %v4881_v17  ;;  %v904_v63 = vpop.f32.mrb[13].mxu0 }
 0x17d   : > { %v905_v0 = vadd.f32 %v904_v63, %v4884_v18  ;;  %v906_v1 = vpop.f32.mrb[14].mxu0  ;;  %1255 = vmatprep.mubr.bf16.mxu1 %v988_v60 }
 0x17e   : > { %v907_v2 = vadd.f32 %v906_v1, %v4881_v17  ;;  %v908_v3 = vpop.f32.mrb[15].mxu0  ;;  %1256 = vmatmul.mubr.bf16.gmra.mrb[8].mxu1 %v987_v59  ;;  %v963_v5 = vmax.f32 %v903_v62, 0.0 }
 0x17f   : > { %v909_v4 = vadd.f32 %v908_v3, %v4884_v18  ;;  %v964_v7 = vmax.f32 %v905_v0, 0.0 }
 0x180   : > { %v965_v6 = vmax.f32 %v907_v2, 0.0 }
 0x181   : > { %v966_v8 = vmax.f32 %v909_v4, 0.0 }
 0x182   : > { %v989_v9 = vpack.c.bf16 %v965_v6, %v963_v5 }
 0x183   : > { %v990_v10 = vpack.c.bf16 %v966_v8, %v964_v7  ;;  %v912_v11 = vpop.f32.mrb[16].mxu0  ;;  %v4058_v7 = vld [vmem:[%s5547_s5 + $0xe4] ss:$8 sps:$4 sm:$0xff]   ;;  %v4059_v8 = vld [vmem:[%s5547_s5 + $0xf0] ss:$8 sps:$4 sm:$0xff]  }
 0x184   : > { %v913_v12 = vadd.f32 %v912_v11, %v4881_v17  ;;  %v914_v13 = vpop.f32.mrb[17].mxu0  ;;  %1596 = vmatprep.subr.bf16.mxu0 %v4058_v7  ;;  %v4067_v11 = vld [vmem:[%s5549_s7 + $0x14] ss:$8 sps:$4 sm:$0xff]  }
 0x185   : > { %v915_v15 = vadd.f32 %v914_v13, %v4884_v18  ;;  %v916_v19 = vpop.f32.mrb[18].mxu0  ;;  %1265 = vmatprep.mubr.bf16.mxu1 %v990_v10  ;;  %v4064_v10 = vld [vmem:[%s5549_s7 + $0x4] ss:$8 sps:$4 sm:$0xff]  }
 0x186   : > { %v917_v20 = vadd.f32 %v916_v19, %v4881_v17  ;;  %v918_v21 = vpop.f32.mrb[19].mxu0  ;;  %1266 = vmatmul.mubr.bf16.gmra.mrb[12].mxu1 %v989_v9  ;;  %v967_v23 = vmax.f32 %v913_v12, 0.0  ;;  %v4062_v9 = vld [vmem:[%s5549_s7] ss:$8 sps:$4 sm:$0xff]   ;;  %1933 = vmatprep.subr.bf16.mxu1 %v4064_v10  ;;  %v4065_v12 = vld [vmem:[%s5549_s7 + $0x10] ss:$8 sps:$4 sm:$0xff]  }
 0x187   : > { %v919_v22 = vadd.f32 %v918_v21, %v4884_v18  ;;  %v968_v25 = vmax.f32 %v915_v15, 0.0  ;;  %1934 = vmatpush1.bf16.msra.mxu1 %v4062_v9  ;;  %v4070_v13 = vld [vmem:[%s5549_s7 + $0x24] ss:$8 sps:$4 sm:$0xff]   ;;  %v4068_v15 = vld [vmem:[%s5549_s7 + $0x20] ss:$8 sps:$4 sm:$0xff]  }
 0x188   : > { %v969_v24 = vmax.f32 %v917_v20, 0.0  ;;  %1935 = vmatprep.subr.bf16.mxu1 %v4067_v11  ;;  %v4073_v19 = vld [vmem:[%s5549_s7 + $0x34] ss:$8 sps:$4 sm:$0xff]   ;;  %v4071_v20 = vld [vmem:[%s5549_s7 + $0x30] ss:$8 sps:$4 sm:$0xff]  }
 0x189   : > { %v970_v26 = vmax.f32 %v919_v22, 0.0  ;;  %v4076_v21 = vld [vmem:[%s5549_s7 + $0x44] ss:$8 sps:$4 sm:$0xff]   ;;  %v4074_v22 = vld [vmem:[%s5549_s7 + $0x40] ss:$8 sps:$4 sm:$0xff]  }
 0x18a   : > { %v991_v27 = vpack.c.bf16 %v969_v24, %v967_v23  ;;  %v4079_v23 = vld [vmem:[%s5549_s7 + $0x54] ss:$8 sps:$4 sm:$0xff]   ;;  %v4077_v24 = vld [vmem:[%s5549_s7 + $0x50] ss:$8 sps:$4 sm:$0xff]  }
 0x18b   : > { %v992_v28 = vpack.c.bf16 %v970_v26, %v968_v25  ;;  %v922_v29 = vpop.f32.mrb[20].mxu0  ;;  %1936 = vmatpush1.bf16.msra.mxu1 %v4065_v12  ;;  %v4082_v25 = vld [vmem:[%s5549_s7 + $0x64] ss:$8 sps:$4 sm:$0xff]   ;;  %v4080_v26 = vld [vmem:[%s5549_s7 + $0x60] ss:$8 sps:$4 sm:$0xff]  }
 0x18c   : > { %v923_v30 = vadd.f32 %v922_v29, %v4881_v17  ;;  %v924_v31 = vpop.f32.mrb[21].mxu0  ;;  %1937 = vmatprep.subr.bf16.mxu1 %v4070_v13  ;;  %v4088_v29 = vld [vmem:[%s5549_s7 + $0x84] ss:$8 sps:$4 sm:$0xff]  }
 0x18d   : > { %v925_v32 = vadd.f32 %v924_v31, %v4884_v18  ;;  %v926_v33 = vpop.f32.mrb[22].mxu0  ;;  %1275 = vmatprep.mubr.bf16.mxu1 %v992_v28  ;;  %v4083_v28 = vld [vmem:[%s5549_s7 + $0x70] ss:$8 sps:$4 sm:$0xff]   ;;  %v4091_v31 = vld [vmem:[%s5549_s7 + $0x94] ss:$8 sps:$4 sm:$0xff]  }
 0x18e   : > { %v927_v34 = vadd.f32 %v926_v33, %v4881_v17  ;;  %v928_v35 = vpop.f32.mrb[23].mxu0  ;;  %1276 = vmatmul.mubr.bf16.gmra.mrb[16].mxu1 %v991_v27  ;;  %v971_v37 = vmax.f32 %v923_v30, 0.0  ;;  %v4085_v27 = vld [vmem:[%s5549_s7 + $0x74] ss:$8 sps:$4 sm:$0xff]   ;;  %v4086_v30 = vld [vmem:[%s5549_s7 + $0x80] ss:$8 sps:$4 sm:$0xff]  }
 0x18f   : > { %v929_v36 = vadd.f32 %v928_v35, %v4884_v18  ;;  %v972_v39 = vmax.f32 %v925_v32, 0.0  ;;  %1938 = vmatpush1.bf16.msra.mxu1 %v4068_v15  ;;  %v4089_v32 = vld [vmem:[%s5549_s7 + $0x90] ss:$8 sps:$4 sm:$0xff]   ;;  %v4094_v33 = vld [vmem:[%s5549_s7 + $0xa4] ss:$8 sps:$4 sm:$0xff]  }
 0x190   : > { %v973_v38 = vmax.f32 %v927_v34, 0.0  ;;  %1939 = vmatprep.subr.bf16.mxu1 %v4073_v19  ;;  %v4092_v34 = vld [vmem:[%s5549_s7 + $0xa0] ss:$8 sps:$4 sm:$0xff]   ;;  %v4097_v35 = vld [vmem:[%s5549_s7 + $0xb4] ss:$8 sps:$4 sm:$0xff]  }
 0x191   : > { %v974_v40 = vmax.f32 %v929_v36, 0.0  ;;  %v4095_v36 = vld [vmem:[%s5549_s7 + $0xb0] ss:$8 sps:$4 sm:$0xff]  }
 0x192   : > { %v993_v41 = vpack.c.bf16 %v973_v38, %v971_v37  ;;  %v4100_v37 = vld [vmem:[%s5549_s7 + $0xc4] ss:$8 sps:$4 sm:$0xff]   ;;  %v4098_v38 = vld [vmem:[%s5549_s7 + $0xc0] ss:$8 sps:$4 sm:$0xff]  }
 0x193   : > { %v994_v42 = vpack.c.bf16 %v974_v40, %v972_v39  ;;  %v932_v43 = vpop.f32.mrb[24].mxu0  ;;  %1940 = vmatpush1.bf16.msra.mxu1 %v4071_v20  ;;  %v4103_v39 = vld [vmem:[%s5549_s7 + $0xd4] ss:$8 sps:$4 sm:$0xff]   ;;  %v4101_v40 = vld [vmem:[%s5549_s7 + $0xd0] ss:$8 sps:$4 sm:$0xff]  }
 0x194   : > { %v933_v44 = vadd.f32 %v932_v43, %v4881_v17  ;;  %v934_v45 = vpop.f32.mrb[25].mxu0  ;;  %1941 = vmatprep.subr.bf16.mxu1 %v4076_v21 }
 0x195   : > { %v935_v46 = vadd.f32 %v934_v45, %v4884_v18  ;;  %v936_v47 = vpop.f32.mrb[26].mxu0  ;;  %1285 = vmatprep.mubr.bf16.mxu1 %v994_v42 }
 0x196   : > { %v937_v48 = vadd.f32 %v936_v47, %v4881_v17  ;;  %v938_v49 = vpop.f32.mrb[27].mxu0  ;;  %1286 = vmatmul.mubr.bf16.gmra.mrb[20].mxu1 %v993_v41  ;;  %v975_v51 = vmax.f32 %v933_v44, 0.0  ;;  %v1031_v41 = vld [vmem:[%s5546_s4] sm:$0x3] }
 0x197   : > { %v939_v50 = vadd.f32 %v938_v49, %v4884_v18  ;;  %v976_v53 = vmax.f32 %v935_v46, 0.0  ;;  %1942 = vmatpush1.bf16.msra.mxu1 %v4074_v22  ;;  %v5018_v42 = vrot.slane %v1031_v41, %v4873_v14  ;;  %v5021_v43 = vrot.slane %v1031_v41, %v4878_v16 }
 0x198   : > { %v977_v52 = vmax.f32 %v937_v48, 0.0  ;;  %1943 = vmatprep.subr.bf16.mxu1 %v4079_v23 }
 0x199   : > { %v978_v54 = vmax.f32 %v939_v50, 0.0 }
 0x19a   : > { %v995_v55 = vpack.c.bf16 %v977_v52, %v975_v51 }
 0x19b   : > { %v996_v56 = vpack.c.bf16 %v978_v54, %v976_v53  ;;  %v942_v57 = vpop.f32.mrb[28].mxu0  ;;  %1944 = vmatpush1.bf16.msra.mxu1 %v4077_v24 }
 0x19c   : > { %v943_v58 = vadd.f32 %v942_v57, %v4881_v17  ;;  %v944_v59 = vpop.f32.mrb[29].mxu0  ;;  %1945 = vmatprep.subr.bf16.mxu1 %v4082_v25 }
 0x19d   : > { %v945_v60 = vadd.f32 %v944_v59, %v4884_v18  ;;  %v946_v61 = vpop.f32.mrb[30].mxu0  ;;  %1295 = vmatprep.mubr.bf16.mxu1 %v996_v56 }
 0x19e   : > { %v947_v62 = vadd.f32 %v946_v61, %v4881_v17  ;;  %v948_v63 = vpop.f32.mrb[31].mxu0  ;;  %1296 = vmatmul.mubr.bf16.gmra.mrb[24].mxu1 %v995_v55  ;;  %v979_v1 = vmax.f32 %v943_v58, 0.0  ;;  %v4056_v17 = vld [vmem:[%s5547_s5 + $0xe0] ss:$8 sps:$4 sm:$0xff]  }
 0x19f   : > { %v949_v0 = vadd.f32 %v948_v63, %v4884_v18  ;;  %v980_v3 = vmax.f32 %v945_v60, 0.0  ;;  %1597 = vmatpush1.bf16.msra.mxu0 %v4056_v17  ;;  %v4061_v18 = vld [vmem:[%s5547_s5 + $0xf4] ss:$8 sps:$4 sm:$0xff]   ;;  %1946 = vmatpush1.bf16.msra.mxu1 %v4080_v26 }
 0x1a0   : > { %v981_v2 = vmax.f32 %v947_v62, 0.0  ;;  %1598 = vmatprep.subr.bf16.mxu0 %v4061_v18  ;;  %1947 = vmatprep.subr.bf16.mxu1 %v4085_v27 }
 0x1a1   : > { %v982_v4 = vmax.f32 %v949_v0, 0.0 }
 0x1a2   : > { %v997_v5 = vpack.c.bf16 %v981_v2, %v979_v1 }
 0x1a3   : > { %v998_v6 = vpack.c.bf16 %v982_v4, %v980_v3  ;;  %1599 = vmatpush1.bf16.msra.mxu0 %v4059_v8  ;;  %1948 = vmatpush1.bf16.msra.mxu1 %v4083_v28 }
 0x1a4   : > { %1949 = vmatprep.subr.bf16.mxu1 %v4088_v29 }
 0x1a5   : > { %1305 = vmatprep.mubr.bf16.mxu1 %v998_v6 }
 0x1a6   : > { %1306 = vmatmul.mubr.bf16.gmra.mrb[28].mxu1 %v997_v5 }
 0x1a7   : > { %1950 = vmatpush1.bf16.msra.mxu1 %v4086_v30 }
 0x1a8   : > { %1951 = vmatprep.subr.bf16.mxu1 %v4091_v31 }
 0x1ab   : > { %1952 = vmatpush1.bf16.msra.mxu1 %v4089_v32 }
 0x1ac   : > { %1953 = vmatprep.subr.bf16.mxu1 %v4094_v33 }
 0x1af   : > { %1954 = vmatpush1.bf16.msra.mxu1 %v4092_v34 }
 0x1b0   : > { %1955 = vmatprep.subr.bf16.mxu1 %v4097_v35 }
 0x1b3   : > { %1956 = vmatpush1.bf16.msra.mxu1 %v4095_v36 }
 0x1b4   : > { %1957 = vmatprep.subr.bf16.mxu1 %v4100_v37 }
 0x1b7   : > { %1958 = vmatpush1.bf16.msra.mxu1 %v4098_v38 }
 0x1b8   : > { %1959 = vmatprep.subr.bf16.mxu1 %v4103_v39 }
 0x1bb   : > { %1960 = vmatpush1.bf16.msra.mxu1 %v4101_v40 }
 0x241   : > { %v1237_v44 = vpop.f32.mrb[0].mxu1 }
 0x242   : > { %v1238_v45 = vadd.f32 %v1237_v44, %v5018_v42  ;;  %v1239_v46 = vpop.f32.mrb[1].mxu1 }
 0x243   : > { %v1240_v47 = vadd.f32 %v1239_v46, %v5021_v43  ;;  %v1241_v48 = vpop.f32.mrb[2].mxu1 }
 0x244   : > { %v1242_v49 = vadd.f32 %v1241_v48, %v5018_v42  ;;  %v1243_v50 = vpop.f32.mrb[3].mxu1  ;;  %v1316_v52 = vmax.f32 %v1238_v45, 0.0 }
 0x245   : > { %v1244_v51 = vadd.f32 %v1243_v50, %v5021_v43  ;;  %v1317_v54 = vmax.f32 %v1240_v47, 0.0 }
 0x246   : > { %v1318_v53 = vmax.f32 %v1242_v49, 0.0 }
 0x247   : > { %v1319_v55 = vmax.f32 %v1244_v51, 0.0 }
 0x248   : > { %v1348_v56 = vpack.c.bf16 %v1318_v53, %v1316_v52 }
 0x249   : > { %v1349_v57 = vpack.c.bf16 %v1319_v55, %v1317_v54  ;;  %v1247_v58 = vpop.f32.mrb[4].mxu1 }
 0x24a   : > { %v1248_v59 = vadd.f32 %v1247_v58, %v5018_v42  ;;  %v1249_v60 = vpop.f32.mrb[5].mxu1 }
 0x24b   : > { %v1250_v61 = vadd.f32 %v1249_v60, %v5021_v43  ;;  %v1251_v62 = vpop.f32.mrb[6].mxu1  ;;  %1600 = vmatprep.mubr.bf16.mxu0 %v1349_v57 }
 0x24c   : > { %v1252_v63 = vadd.f32 %v1251_v62, %v5018_v42  ;;  %v1253_v0 = vpop.f32.mrb[7].mxu1  ;;  %1601 = vmatmul.mubr.bf16.vlgmr.msra.gmra.mrb[32].mxu0 %v1348_v56  ;;  %v1320_v2 = vmax.f32 %v1248_v59, 0.0 }
 0x24d   : > { %v1254_v1 = vadd.f32 %v1253_v0, %v5021_v43  ;;  %v1321_v4 = vmax.f32 %v1250_v61, 0.0 }
 0x24e   : > { %v1322_v3 = vmax.f32 %v1252_v63, 0.0 }
 0x24f   : > { %v1323_v5 = vmax.f32 %v1254_v1, 0.0 }
 0x250   : > { %v1350_v6 = vpack.c.bf16 %v1322_v3, %v1320_v2 }
 0x251   : > { %v1351_v7 = vpack.c.bf16 %v1323_v5, %v1321_v4  ;;  %v1257_v17 = vpop.f32.mrb[8].mxu1 }
 0x252   : > { %v1258_v18 = vadd.f32 %v1257_v17, %v5018_v42  ;;  %v1259_v8 = vpop.f32.mrb[9].mxu1 }
 0x253   : > { %v1260_v9 = vadd.f32 %v1259_v8, %v5021_v43  ;;  %v1261_v10 = vpop.f32.mrb[10].mxu1  ;;  %1610 = vmatprep.mubr.bf16.mxu0 %v1351_v7 }
 0x254   : > { %v1262_v11 = vadd.f32 %v1261_v10, %v5018_v42  ;;  %v1263_v12 = vpop.f32.mrb[11].mxu1  ;;  %1611 = vmatmul.mubr.bf16.gmra.mrb[36].mxu0 %v1350_v6  ;;  %v1324_v15 = vmax.f32 %v1258_v18, 0.0 }
 0x255   : > { %v1264_v13 = vadd.f32 %v1263_v12, %v5021_v43  ;;  %v1325_v20 = vmax.f32 %v1260_v9, 0.0 }
 0x256   : > { %v1326_v19 = vmax.f32 %v1262_v11, 0.0 }
 0x257   : > { %v1327_v21 = vmax.f32 %v1264_v13, 0.0 }
 0x258   : > { %v1352_v22 = vpack.c.bf16 %v1326_v19, %v1324_v15 }
 0x259   : > { %v1353_v23 = vpack.c.bf16 %v1327_v21, %v1325_v20  ;;  %v1267_v24 = vpop.f32.mrb[12].mxu1 }
 0x25a   : > { %v1268_v25 = vadd.f32 %v1267_v24, %v5018_v42  ;;  %v1269_v26 = vpop.f32.mrb[13].mxu1 }
 0x25b   : > { %v1270_v27 = vadd.f32 %v1269_v26, %v5021_v43  ;;  %v1271_v28 = vpop.f32.mrb[14].mxu1  ;;  %1620 = vmatprep.mubr.bf16.mxu0 %v1353_v23 }
 0x25c   : > { %v1272_v29 = vadd.f32 %v1271_v28, %v5018_v42  ;;  %v1273_v30 = vpop.f32.mrb[15].mxu1  ;;  %1621 = vmatmul.mubr.bf16.gmra.mrb[40].mxu0 %v1352_v22  ;;  %v1328_v32 = vmax.f32 %v1268_v25, 0.0 }
 0x25d   : > { %v1274_v31 = vadd.f32 %v1273_v30, %v5021_v43  ;;  %v1329_v34 = vmax.f32 %v1270_v27, 0.0 }
 0x25e   : > { %v1330_v33 = vmax.f32 %v1272_v29, 0.0 }
 0x25f   : > { %v1331_v35 = vmax.f32 %v1274_v31, 0.0 }
 0x260   : > { %v1354_v36 = vpack.c.bf16 %v1330_v33, %v1328_v32 }
 0x261   : > { %v1355_v37 = vpack.c.bf16 %v1331_v35, %v1329_v34  ;;  %v1277_v38 = vpop.f32.mrb[16].mxu1  ;;  %v4106_v34 = vld [vmem:[%s5549_s7 + $0xe4] ss:$8 sps:$4 sm:$0xff]   ;;  %v4107_v35 = vld [vmem:[%s5549_s7 + $0xf0] ss:$8 sps:$4 sm:$0xff]  }
 0x262   : > { %v1278_v39 = vadd.f32 %v1277_v38, %v5018_v42  ;;  %v1279_v40 = vpop.f32.mrb[17].mxu1  ;;  %1961 = vmatprep.subr.bf16.mxu1 %v4106_v34  ;;  %v4115_v38 = vld [vmem:[%s5551_s9 + $0x14] ss:$8 sps:$4 sm:$0xff]  }
 0x263   : > { %v1280_v41 = vadd.f32 %v1279_v40, %v5021_v43  ;;  %v1281_v44 = vpop.f32.mrb[18].mxu1  ;;  %1630 = vmatprep.mubr.bf16.mxu0 %v1355_v37  ;;  %v4112_v37 = vld [vmem:[%s5551_s9 + $0x4] ss:$8 sps:$4 sm:$0xff]  }
 0x264   : > { %v1282_v45 = vadd.f32 %v1281_v44, %v5018_v42  ;;  %v1283_v46 = vpop.f32.mrb[19].mxu1  ;;  %1631 = vmatmul.mubr.bf16.gmra.mrb[44].mxu0 %v1354_v36  ;;  %v1332_v48 = vmax.f32 %v1278_v39, 0.0  ;;  %v4110_v36 = vld [vmem:[%s5551_s9] ss:$8 sps:$4 sm:$0xff]   ;;  %2330 = vmatprep.subr.bf16.mxu0 %v4112_v37  ;;  %v4113_v39 = vld [vmem:[%s5551_s9 + $0x10] ss:$8 sps:$4 sm:$0xff]  }
 0x265   : > { %v1284_v47 = vadd.f32 %v1283_v46, %v5021_v43  ;;  %v1333_v50 = vmax.f32 %v1280_v41, 0.0  ;;  %2331 = vmatpush1.bf16.msra.mxu0 %v4110_v36  ;;  %v4118_v40 = vld [vmem:[%s5551_s9 + $0x24] ss:$8 sps:$4 sm:$0xff]   ;;  %v4116_v41 = vld [vmem:[%s5551_s9 + $0x20] ss:$8 sps:$4 sm:$0xff]  }
 0x266   : > { %v1334_v49 = vmax.f32 %v1282_v45, 0.0  ;;  %2332 = vmatprep.subr.bf16.mxu0 %v4115_v38  ;;  %v4121_v44 = vld [vmem:[%s5551_s9 + $0x34] ss:$8 sps:$4 sm:$0xff]   ;;  %v4119_v45 = vld [vmem:[%s5551_s9 + $0x30] ss:$8 sps:$4 sm:$0xff]  }
 0x267   : > { %v1335_v51 = vmax.f32 %v1284_v47, 0.0  ;;  %v4124_v46 = vld [vmem:[%s5551_s9 + $0x44] ss:$8 sps:$4 sm:$0xff]   ;;  %v4122_v47 = vld [vmem:[%s5551_s9 + $0x40] ss:$8 sps:$4 sm:$0xff]  }
 0x268   : > { %v1356_v52 = vpack.c.bf16 %v1334_v49, %v1332_v48  ;;  %v4127_v48 = vld [vmem:[%s5551_s9 + $0x54] ss:$8 sps:$4 sm:$0xff]   ;;  %v4125_v49 = vld [vmem:[%s5551_s9 + $0x50] ss:$8 sps:$4 sm:$0xff]  }
 0x269   : > { %v1357_v53 = vpack.c.bf16 %v1335_v51, %v1333_v50  ;;  %v1287_v54 = vpop.f32.mrb[20].mxu1  ;;  %2333 = vmatpush1.bf16.msra.mxu0 %v4113_v39  ;;  %v4130_v50 = vld [vmem:[%s5551_s9 + $0x64] ss:$8 sps:$4 sm:$0xff]   ;;  %v4128_v51 = vld [vmem:[%s5551_s9 + $0x60] ss:$8 sps:$4 sm:$0xff]  }
 0x26a   : > { %v1288_v55 = vadd.f32 %v1287_v54, %v5018_v42  ;;  %v1289_v56 = vpop.f32.mrb[21].mxu1  ;;  %2334 = vmatprep.subr.bf16.mxu0 %v4118_v40  ;;  %v4136_v54 = vld [vmem:[%s5551_s9 + $0x84] ss:$8 sps:$4 sm:$0xff]  }
 0x26b   : > { %v1290_v57 = vadd.f32 %v1289_v56, %v5021_v43  ;;  %v1291_v58 = vpop.f32.mrb[22].mxu1  ;;  %1640 = vmatprep.mubr.bf16.mxu0 %v1357_v53  ;;  %v4131_v53 = vld [vmem:[%s5551_s9 + $0x70] ss:$8 sps:$4 sm:$0xff]   ;;  %v4139_v56 = vld [vmem:[%s5551_s9 + $0x94] ss:$8 sps:$4 sm:$0xff]  }
 0x26c   : > { %v1292_v59 = vadd.f32 %v1291_v58, %v5018_v42  ;;  %v1293_v60 = vpop.f32.mrb[23].mxu1  ;;  %1641 = vmatmul.mubr.bf16.gmra.mrb[48].mxu0 %v1356_v52  ;;  %v1336_v62 = vmax.f32 %v1288_v55, 0.0  ;;  %v4133_v52 = vld [vmem:[%s5551_s9 + $0x74] ss:$8 sps:$4 sm:$0xff]   ;;  %v4134_v55 = vld [vmem:[%s5551_s9 + $0x80] ss:$8 sps:$4 sm:$0xff]  }
 0x26d   : > { %v1294_v61 = vadd.f32 %v1293_v60, %v5021_v43  ;;  %v1337_v0 = vmax.f32 %v1290_v57, 0.0  ;;  %2335 = vmatpush1.bf16.msra.mxu0 %v4116_v41  ;;  %v4137_v57 = vld [vmem:[%s5551_s9 + $0x90] ss:$8 sps:$4 sm:$0xff]   ;;  %v4142_v58 = vld [vmem:[%s5551_s9 + $0xa4] ss:$8 sps:$4 sm:$0xff]  }
 0x26e   : > { %v1338_v63 = vmax.f32 %v1292_v59, 0.0  ;;  %2336 = vmatprep.subr.bf16.mxu0 %v4121_v44  ;;  %v4140_v59 = vld [vmem:[%s5551_s9 + $0xa0] ss:$8 sps:$4 sm:$0xff]   ;;  %v4145_v60 = vld [vmem:[%s5551_s9 + $0xb4] ss:$8 sps:$4 sm:$0xff]  }
 0x26f   : > { %v1339_v1 = vmax.f32 %v1294_v61, 0.0  ;;  %v4143_v61 = vld [vmem:[%s5551_s9 + $0xb0] ss:$8 sps:$4 sm:$0xff]  }
 0x270   : > { %v1358_v2 = vpack.c.bf16 %v1338_v63, %v1336_v62  ;;  %v4148_v62 = vld [vmem:[%s5551_s9 + $0xc4] ss:$8 sps:$4 sm:$0xff]   ;;  %v4146_v63 = vld [vmem:[%s5551_s9 + $0xc0] ss:$8 sps:$4 sm:$0xff]  }
 0x271   : > { %v1359_v3 = vpack.c.bf16 %v1339_v1, %v1337_v0  ;;  %v1297_v4 = vpop.f32.mrb[24].mxu1  ;;  %2337 = vmatpush1.bf16.msra.mxu0 %v4119_v45  ;;  %v1396_v0 = vld [vmem:[%s5548_s6] sm:$0x3] }
 0x272   : > { %v1298_v5 = vadd.f32 %v1297_v4, %v5018_v42  ;;  %v1299_v6 = vpop.f32.mrb[25].mxu1  ;;  %2338 = vmatprep.subr.bf16.mxu0 %v4124_v46  ;;  %v5149_v1 = vrot.slane %v1396_v0, %v4873_v14 }
 0x273   : > { %v1300_v7 = vadd.f32 %v1299_v6, %v5021_v43  ;;  %v1301_v17 = vpop.f32.mrb[26].mxu1  ;;  %1650 = vmatprep.mubr.bf16.mxu0 %v1359_v3 }
 0x274   : > { %v1302_v18 = vadd.f32 %v1301_v17, %v5018_v42  ;;  %v1303_v8 = vpop.f32.mrb[27].mxu1  ;;  %1651 = vmatmul.mubr.bf16.gmra.mrb[52].mxu0 %v1358_v2  ;;  %v1340_v10 = vmax.f32 %v1298_v5, 0.0  ;;  %v5152_v2 = vrot.slane %v1396_v0, %v4878_v16 }
 0x275   : > { %v1304_v9 = vadd.f32 %v1303_v8, %v5021_v43  ;;  %v1341_v12 = vmax.f32 %v1300_v7, 0.0  ;;  %2339 = vmatpush1.bf16.msra.mxu0 %v4122_v47 }
 0x276   : > { %v1342_v11 = vmax.f32 %v1302_v18, 0.0  ;;  %2340 = vmatprep.subr.bf16.mxu0 %v4127_v48 }
 0x277   : > { %v1343_v13 = vmax.f32 %v1304_v9, 0.0 }
 0x278   : > { %v1360_v15 = vpack.c.bf16 %v1342_v11, %v1340_v10 }
 0x279   : > { %v1361_v19 = vpack.c.bf16 %v1343_v13, %v1341_v12  ;;  %v1307_v20 = vpop.f32.mrb[28].mxu1  ;;  %2341 = vmatpush1.bf16.msra.mxu0 %v4125_v49 }
 0x27a   : > { %v1308_v21 = vadd.f32 %v1307_v20, %v5018_v42  ;;  %v1309_v22 = vpop.f32.mrb[29].mxu1  ;;  %2342 = vmatprep.subr.bf16.mxu0 %v4130_v50 }
 0x27b   : > { %v1310_v23 = vadd.f32 %v1309_v22, %v5021_v43  ;;  %v1311_v24 = vpop.f32.mrb[30].mxu1  ;;  %1660 = vmatprep.mubr.bf16.mxu0 %v1361_v19 }
 0x27c   : > { %v1312_v25 = vadd.f32 %v1311_v24, %v5018_v42  ;;  %v1313_v26 = vpop.f32.mrb[31].mxu1  ;;  %1661 = vmatmul.mubr.bf16.gmra.mrb[56].mxu0 %v1360_v15  ;;  %v1344_v28 = vmax.f32 %v1308_v21, 0.0  ;;  %v4104_v42 = vld [vmem:[%s5549_s7 + $0xe0] ss:$8 sps:$4 sm:$0xff]  }
 0x27d   : > { %v1314_v27 = vadd.f32 %v1313_v26, %v5021_v43  ;;  %v1345_v30 = vmax.f32 %v1310_v23, 0.0  ;;  %1962 = vmatpush1.bf16.msra.mxu1 %v4104_v42  ;;  %v4109_v43 = vld [vmem:[%s5549_s7 + $0xf4] ss:$8 sps:$4 sm:$0xff]   ;;  %2343 = vmatpush1.bf16.msra.mxu0 %v4128_v51 }
 0x27e   : > { %v1346_v29 = vmax.f32 %v1312_v25, 0.0  ;;  %1963 = vmatprep.subr.bf16.mxu1 %v4109_v43  ;;  %2344 = vmatprep.subr.bf16.mxu0 %v4133_v52 }
 0x27f   : > { %v1347_v31 = vmax.f32 %v1314_v27, 0.0 }
 0x280   : > { %v1362_v32 = vpack.c.bf16 %v1346_v29, %v1344_v28 }
 0x281   : > { %v1363_v33 = vpack.c.bf16 %v1347_v31, %v1345_v30  ;;  %1964 = vmatpush1.bf16.msra.mxu1 %v4107_v35  ;;  %2345 = vmatpush1.bf16.msra.mxu0 %v4131_v53 }
 0x282   : > { %2346 = vmatprep.subr.bf16.mxu0 %v4136_v54 }
 0x283   : > { %1670 = vmatprep.mubr.bf16.mxu0 %v1363_v33 }
 0x284   : > { %1671 = vmatmul.mubr.bf16.gmra.mrb[60].mxu0 %v1362_v32 }
 0x285   : > { %2347 = vmatpush1.bf16.msra.mxu0 %v4134_v55 }
 0x286   : > { %2348 = vmatprep.subr.bf16.mxu0 %v4139_v56 }
 0x289   : > { %2349 = vmatpush1.bf16.msra.mxu0 %v4137_v57 }
 0x28a   : > { %2350 = vmatprep.subr.bf16.mxu0 %v4142_v58 }
 0x28d   : > { %2351 = vmatpush1.bf16.msra.mxu0 %v4140_v59 }
 0x28e   : > { %2352 = vmatprep.subr.bf16.mxu0 %v4145_v60 }
 0x291   : > { %2353 = vmatpush1.bf16.msra.mxu0 %v4143_v61 }
 0x292   : > { %2354 = vmatprep.subr.bf16.mxu0 %v4148_v62 }
 0x295   : > { %2355 = vmatpush1.bf16.msra.mxu0 %v4146_v63 }
 0x31f   : > { %v1602_v3 = vpop.f32.mrb[32].mxu0 }
 0x320   : > { %v1603_v4 = vadd.f32 %v1602_v3, %v5149_v1  ;;  %v1604_v5 = vpop.f32.mrb[33].mxu0 }
 0x321   : > { %v1605_v6 = vadd.f32 %v1604_v5, %v5152_v2  ;;  %v1606_v7 = vpop.f32.mrb[34].mxu0 }
 0x322   : > { %v1607_v17 = vadd.f32 %v1606_v7, %v5149_v1  ;;  %v1608_v18 = vpop.f32.mrb[35].mxu0  ;;  %v1681_v9 = vmax.f32 %v1603_v4, 0.0 }
 0x323   : > { %v1609_v8 = vadd.f32 %v1608_v18, %v5152_v2  ;;  %v1682_v11 = vmax.f32 %v1605_v6, 0.0 }
 0x324   : > { %v1683_v10 = vmax.f32 %v1607_v17, 0.0 }
 0x325   : > { %v1684_v12 = vmax.f32 %v1609_v8, 0.0 }
 0x326   : > { %v1713_v13 = vpack.c.bf16 %v1683_v10, %v1681_v9 }
 0x327   : > { %v1714_v15 = vpack.c.bf16 %v1684_v12, %v1682_v11  ;;  %v1612_v19 = vpop.f32.mrb[36].mxu0 }
 0x328   : > { %v1613_v20 = vadd.f32 %v1612_v19, %v5149_v1  ;;  %v1614_v21 = vpop.f32.mrb[37].mxu0 }
 0x329   : > { %v1615_v22 = vadd.f32 %v1614_v21, %v5152_v2  ;;  %v1616_v23 = vpop.f32.mrb[38].mxu0  ;;  %1965 = vmatprep.mubr.bf16.mxu1 %v1714_v15 }
 0x32a   : > { %v1617_v24 = vadd.f32 %v1616_v23, %v5149_v1  ;;  %v1618_v25 = vpop.f32.mrb[39].mxu0  ;;  %1966 = vmatmul.mubr.bf16.vlgmr.msra.gmra.mrb[32].mxu1 %v1713_v13  ;;  %v1685_v27 = vmax.f32 %v1613_v20, 0.0 }
 0x32b   : > { %v1619_v26 = vadd.f32 %v1618_v25, %v5152_v2  ;;  %v1686_v29 = vmax.f32 %v1615_v22, 0.0 }
 0x32c   : > { %v1687_v28 = vmax.f32 %v1617_v24, 0.0 }
 0x32d   : > { %v1688_v30 = vmax.f32 %v1619_v26, 0.0 }
 0x32e   : > { %v1715_v31 = vpack.c.bf16 %v1687_v28, %v1685_v27 }
 0x32f   : > { %v1716_v32 = vpack.c.bf16 %v1688_v30, %v1686_v29  ;;  %v1622_v33 = vpop.f32.mrb[40].mxu0 }
 0x330   : > { %v1623_v34 = vadd.f32 %v1622_v33, %v5149_v1  ;;  %v1624_v42 = vpop.f32.mrb[41].mxu0 }
 0x331   : > { %v1625_v43 = vadd.f32 %v1624_v42, %v5152_v2  ;;  %v1626_v35 = vpop.f32.mrb[42].mxu0  ;;  %1975 = vmatprep.mubr.bf16.mxu1 %v1716_v32 }
 0x332   : > { %v1627_v36 = vadd.f32 %v1626_v35, %v5149_v1  ;;  %v1628_v37 = vpop.f32.mrb[43].mxu0  ;;  %1976 = vmatmul.mubr.bf16.gmra.mrb[36].mxu1 %v1715_v31  ;;  %v1689_v39 = vmax.f32 %v1623_v34, 0.0 }
 0x333   : > { %v1629_v38 = vadd.f32 %v1628_v37, %v5152_v2  ;;  %v1690_v41 = vmax.f32 %v1625_v43, 0.0 }
 0x334   : > { %v1691_v40 = vmax.f32 %v1627_v36, 0.0 }
 0x335   : > { %v1692_v44 = vmax.f32 %v1629_v38, 0.0 }
 0x336   : > { %v1717_v45 = vpack.c.bf16 %v1691_v40, %v1689_v39 }
 0x337   : > { %v1718_v46 = vpack.c.bf16 %v1692_v44, %v1690_v41  ;;  %v1632_v47 = vpop.f32.mrb[44].mxu0 }
 0x338   : > { %v1633_v48 = vadd.f32 %v1632_v47, %v5149_v1  ;;  %v1634_v49 = vpop.f32.mrb[45].mxu0 }
 0x339   : > { %v1635_v50 = vadd.f32 %v1634_v49, %v5152_v2  ;;  %v1636_v51 = vpop.f32.mrb[46].mxu0  ;;  %1985 = vmatprep.mubr.bf16.mxu1 %v1718_v46 }
 0x33a   : > { %v1637_v52 = vadd.f32 %v1636_v51, %v5149_v1  ;;  %v1638_v53 = vpop.f32.mrb[47].mxu0  ;;  %1986 = vmatmul.mubr.bf16.gmra.mrb[40].mxu1 %v1717_v45  ;;  %v1693_v55 = vmax.f32 %v1633_v48, 0.0 }
 0x33b   : > { %v1639_v54 = vadd.f32 %v1638_v53, %v5152_v2  ;;  %v1694_v57 = vmax.f32 %v1635_v50, 0.0 }
 0x33c   : > { %v1695_v56 = vmax.f32 %v1637_v52, 0.0 }
 0x33d   : > { %v1696_v58 = vmax.f32 %v1639_v54, 0.0 }
 0x33e   : > { %v1719_v59 = vpack.c.bf16 %v1695_v56, %v1693_v55 }
 0x33f   : > { %v1720_v60 = vpack.c.bf16 %v1696_v58, %v1694_v57  ;;  %v1642_v61 = vpop.f32.mrb[48].mxu0  ;;  %v4151_v57 = vld [vmem:[%s5551_s9 + $0xd4] ss:$8 sps:$4 sm:$0xff]   ;;  %v4152_v58 = vld [vmem:[%s5551_s9 + $0xe0] ss:$8 sps:$4 sm:$0xff]  }
 0x340   : > { %v1643_v62 = vadd.f32 %v1642_v61, %v5149_v1  ;;  %v1644_v63 = vpop.f32.mrb[49].mxu0  ;;  %2356 = vmatprep.subr.bf16.mxu0 %v4151_v57  ;;  %v4158_v61 = vld [vmem:[%s5553_s11] ss:$8 sps:$4 sm:$0xff]  }
 0x341   : > { %v1645_v0 = vadd.f32 %v1644_v63, %v5152_v2  ;;  %v1646_v3 = vpop.f32.mrb[50].mxu0  ;;  %1995 = vmatprep.mubr.bf16.mxu1 %v1720_v60  ;;  %v4155_v60 = vld [vmem:[%s5551_s9 + $0xf0] ss:$8 sps:$4 sm:$0xff]   ;;  %v4163_v63 = vld [vmem:[%s5553_s11 + $0x14] ss:$8 sps:$4 sm:$0xff]  }
 0x342   : > { %v1647_v4 = vadd.f32 %v1646_v3, %v5149_v1  ;;  %v1648_v5 = vpop.f32.mrb[51].mxu0  ;;  %1996 = vmatmul.mubr.bf16.gmra.mrb[44].mxu1 %v1719_v59  ;;  %v1697_v7 = vmax.f32 %v1643_v62, 0.0  ;;  %v4157_v59 = vld [vmem:[%s5551_s9 + $0xf4] ss:$8 sps:$4 sm:$0xff]   ;;  %v4160_v62 = vld [vmem:[%s5553_s11 + $0x4] ss:$8 sps:$4 sm:$0xff]  }
 0x343   : > { %v1649_v6 = vadd.f32 %v1648_v5, %v5152_v2  ;;  %v1698_v18 = vmax.f32 %v1645_v0, 0.0  ;;  %2695 = vmatprep.subr.bf16.mxu1 %v4160_v62  ;;  %v4161_v0 = vld [vmem:[%s5553_s11 + $0x10] ss:$8 sps:$4 sm:$0xff]   ;;  %v4166_v3 = vld [vmem:[%s5553_s11 + $0x24] ss:$8 sps:$4 sm:$0xff]  }
 0x344   : > { %v1699_v17 = vmax.f32 %v1647_v4, 0.0  ;;  %2696 = vmatpush1.bf16.msra.mxu1 %v4158_v61  ;;  %v4164_v4 = vld [vmem:[%s5553_s11 + $0x20] ss:$8 sps:$4 sm:$0xff]   ;;  %v4169_v5 = vld [vmem:[%s5553_s11 + $0x34] ss:$8 sps:$4 sm:$0xff]  }
 0x345   : > { %v1700_v8 = vmax.f32 %v1649_v6, 0.0  ;;  %2697 = vmatprep.subr.bf16.mxu1 %v4163_v63  ;;  %v4167_v6 = vld [vmem:[%s5553_s11 + $0x30] ss:$8 sps:$4 sm:$0xff]  }
 0x346   : > { %v1721_v9 = vpack.c.bf16 %v1699_v17, %v1697_v7  ;;  %v4172_v7 = vld [vmem:[%s5553_s11 + $0x44] ss:$8 sps:$4 sm:$0xff]   ;;  %v4170_v17 = vld [vmem:[%s5553_s11 + $0x40] ss:$8 sps:$4 sm:$0xff]  }
 0x347   : > { %v1722_v10 = vpack.c.bf16 %v1700_v8, %v1698_v18  ;;  %v1652_v11 = vpop.f32.mrb[52].mxu0  ;;  %v4175_v18 = vld [vmem:[%s5553_s11 + $0x54] ss:$8 sps:$4 sm:$0xff]   ;;  %v4173_v8 = vld [vmem:[%s5553_s11 + $0x50] ss:$8 sps:$4 sm:$0xff]  }
 0x348   : > { %v1653_v12 = vadd.f32 %v1652_v11, %v5149_v1  ;;  %v1654_v13 = vpop.f32.mrb[53].mxu0  ;;  %2698 = vmatpush1.bf16.msra.mxu1 %v4161_v0  ;;  %v4181_v11 = vld [vmem:[%s5553_s11 + $0x74] ss:$8 sps:$4 sm:$0xff]   ;;  %v4274_v0 = vld [vmem:[%s4596_s19 + $0x20] sm:$0xff] }
 0x349   : > { %v1655_v15 = vadd.f32 %v1654_v13, %v5152_v2  ;;  %v1656_v19 = vpop.f32.mrb[54].mxu0  ;;  %2005 = vmatprep.mubr.bf16.mxu1 %v1722_v10  ;;  %2699 = vmatprep.subr.bf16.mxu1 %v4166_v3  ;;  %v4176_v10 = vld [vmem:[%s5553_s11 + $0x60] ss:$8 sps:$4 sm:$0xff]   ;;  %v4184_v13 = vld [vmem:[%s5553_s11 + $0x84] ss:$8 sps:$4 sm:$0xff]  }
 0x34a   : > { %v1657_v20 = vadd.f32 %v1656_v19, %v5149_v1  ;;  %v1658_v21 = vpop.f32.mrb[55].mxu0  ;;  %2006 = vmatmul.mubr.bf16.gmra.mrb[48].mxu1 %v1721_v9  ;;  %v1701_v23 = vmax.f32 %v1653_v12, 0.0  ;;  %v4178_v9 = vld [vmem:[%s5553_s11 + $0x64] ss:$8 sps:$4 sm:$0xff]   ;;  %v4179_v12 = vld [vmem:[%s5553_s11 + $0x70] ss:$8 sps:$4 sm:$0xff]  }
 0x34b   : > { %v1659_v22 = vadd.f32 %v1658_v21, %v5152_v2  ;;  %v1702_v25 = vmax.f32 %v1655_v15, 0.0  ;;  %v4182_v15 = vld [vmem:[%s5553_s11 + $0x80] ss:$8 sps:$4 sm:$0xff]   ;;  %v4187_v19 = vld [vmem:[%s5553_s11 + $0x94] ss:$8 sps:$4 sm:$0xff]  }
 0x34c   : > { %v1703_v24 = vmax.f32 %v1657_v20, 0.0  ;;  %2700 = vmatpush1.bf16.msra.mxu1 %v4164_v4  ;;  %v4185_v20 = vld [vmem:[%s5553_s11 + $0x90] ss:$8 sps:$4 sm:$0xff]   ;;  %v4190_v21 = vld [vmem:[%s5553_s11 + $0xa4] ss:$8 sps:$4 sm:$0xff]  }
 0x34d   : > { %v1704_v26 = vmax.f32 %v1659_v22, 0.0  ;;  %2701 = vmatprep.subr.bf16.mxu1 %v4169_v5  ;;  %v4188_v22 = vld [vmem:[%s5553_s11 + $0xa0] ss:$8 sps:$4 sm:$0xff]   ;;  %v4275_v4 = vld [vmem:[%s4596_s19 + $0x30] sm:$0xff] }
 0x34e   : > { %v1723_v27 = vpack.c.bf16 %v1703_v24, %v1701_v23  ;;  %v4193_v23 = vld [vmem:[%s5553_s11 + $0xb4] ss:$8 sps:$4 sm:$0xff]   ;;  %v4191_v24 = vld [vmem:[%s5553_s11 + $0xb0] ss:$8 sps:$4 sm:$0xff]  }
 0x34f   : > { %v1724_v28 = vpack.c.bf16 %v1704_v26, %v1702_v25  ;;  %v1662_v29 = vpop.f32.mrb[56].mxu0  ;;  %v4196_v25 = vld [vmem:[%s5553_s11 + $0xc4] ss:$8 sps:$4 sm:$0xff]   ;;  %v4194_v26 = vld [vmem:[%s5553_s11 + $0xc0] ss:$8 sps:$4 sm:$0xff]  }
 0x350   : > { %v1663_v30 = vadd.f32 %v1662_v29, %v5149_v1  ;;  %v1664_v31 = vpop.f32.mrb[57].mxu0  ;;  %2702 = vmatpush1.bf16.msra.mxu1 %v4167_v6  ;;  %v1761_v29 = vld [vmem:[%s5550_s8] sm:$0x3]  ;;  %v4276_v6 = vld [vmem:[%s4596_s19 + $0x28] sm:$0xff] }
 0x351   : > { %v1665_v32 = vadd.f32 %v1664_v31, %v5152_v2  ;;  %v1666_v33 = vpop.f32.mrb[58].mxu0  ;;  %2015 = vmatprep.mubr.bf16.mxu1 %v1724_v28  ;;  %2703 = vmatprep.subr.bf16.mxu1 %v4172_v7  ;;  %v4197_v28 = vld [vmem:[%s5553_s11 + $0xd0] ss:$8 sps:$4 sm:$0xff]   ;;  %v5295_v31 = vrot.slane %v1761_v29, %v4878_v16 }
 0x352   : > { %v1667_v34 = vadd.f32 %v1666_v33, %v5149_v1  ;;  %v1668_v42 = vpop.f32.mrb[59].mxu0  ;;  %2016 = vmatmul.mubr.bf16.gmra.mrb[52].mxu1 %v1723_v27  ;;  %v1705_v35 = vmax.f32 %v1663_v30, 0.0  ;;  %v4199_v27 = vld [vmem:[%s5553_s11 + $0xd4] ss:$8 sps:$4 sm:$0xff]   ;;  %v5292_v30 = vrot.slane %v1761_v29, %v4873_v14 }
 0x353   : > { %v1669_v43 = vadd.f32 %v1668_v42, %v5152_v2  ;;  %v1706_v37 = vmax.f32 %v1665_v32, 0.0 }
 0x354   : > { %v1707_v36 = vmax.f32 %v1667_v34, 0.0  ;;  %2704 = vmatpush1.bf16.msra.mxu1 %v4170_v17  ;;  %v4277_v17 = vld [vmem:[%s4596_s19 + $0x38] sm:$0xff] }
 0x355   : > { %v1708_v38 = vmax.f32 %v1669_v43, 0.0  ;;  %2705 = vmatprep.subr.bf16.mxu1 %v4175_v18 }
 0x356   : > { %v1725_v39 = vpack.c.bf16 %v1707_v36, %v1705_v35 }
 0x357   : > { %v1726_v40 = vpack.c.bf16 %v1708_v38, %v1706_v37  ;;  %v1672_v41 = vpop.f32.mrb[60].mxu0 }
 0x358   : > { %v1673_v44 = vadd.f32 %v1672_v41, %v5149_v1  ;;  %v1674_v45 = vpop.f32.mrb[61].mxu0  ;;  %2706 = vmatpush1.bf16.msra.mxu1 %v4173_v8 }
 0x359   : > { %v1675_v46 = vadd.f32 %v1674_v45, %v5152_v2  ;;  %v1676_v47 = vpop.f32.mrb[62].mxu0  ;;  %2025 = vmatprep.mubr.bf16.mxu1 %v1726_v40  ;;  %2707 = vmatprep.subr.bf16.mxu1 %v4178_v9 }
 0x35a   : > { %v1677_v48 = vadd.f32 %v1676_v47, %v5149_v1  ;;  %v1678_v49 = vpop.f32.mrb[63].mxu0  ;;  %2026 = vmatmul.mubr.bf16.gmra.mrb[56].mxu1 %v1725_v39  ;;  %v1709_v51 = vmax.f32 %v1673_v44, 0.0  ;;  %v4149_v1 = vld [vmem:[%s5551_s9 + $0xd0] ss:$8 sps:$4 sm:$0xff]   ;;  %v4270_v44 = vld [vmem:[%s4596_s19] sm:$0xff] }
 0x35b   : > { %v1679_v50 = vadd.f32 %v1678_v49, %v5152_v2  ;;  %v1710_v53 = vmax.f32 %v1675_v46, 0.0  ;;  %2357 = vmatpush1.bf16.msra.mxu0 %v4149_v1  ;;  %v4154_v2 = vld [vmem:[%s5551_s9 + $0xe4] ss:$8 sps:$4 sm:$0xff]   ;;  %v4271_v46 = vld [vmem:[%s4596_s19 + $0x10] sm:$0xff] }
 0x35c   : > { %v1711_v52 = vmax.f32 %v1677_v48, 0.0  ;;  %2358 = vmatprep.subr.bf16.mxu0 %v4154_v2  ;;  %2708 = vmatpush1.bf16.msra.mxu1 %v4176_v10  ;;  %v4272_v48 = vld [vmem:[%s4596_s19 + $0x8] sm:$0xff] }
 0x35d   : > { %v1712_v54 = vmax.f32 %v1679_v50, 0.0  ;;  %2709 = vmatprep.subr.bf16.mxu1 %v4181_v11  ;;  %v4273_v50 = vld [vmem:[%s4596_s19 + $0x18] sm:$0xff] }
 0x35e   : > { %v1727_v55 = vpack.c.bf16 %v1711_v52, %v1709_v51 }
 0x35f   : > { %v1728_v56 = vpack.c.bf16 %v1712_v54, %v1710_v53  ;;  %2359 = vmatpush1.bf16.msra.mxu0 %v4152_v58 }
 0x360   : > { %2360 = vmatprep.subr.bf16.mxu0 %v4157_v59  ;;  %2710 = vmatpush1.bf16.msra.mxu1 %v4179_v12 }
 0x361   : > { %2035 = vmatprep.mubr.bf16.mxu1 %v1728_v56  ;;  %2711 = vmatprep.subr.bf16.mxu1 %v4184_v13 }
 0x362   : > { %2036 = vmatmul.mubr.bf16.gmra.mrb[60].mxu1 %v1727_v55 }
 0x363   : > { %2361 = vmatpush1.bf16.msra.mxu0 %v4155_v60 }
 0x364   : > { %2712 = vmatpush1.bf16.msra.mxu1 %v4182_v15 }
 0x365   : > { %2713 = vmatprep.subr.bf16.mxu1 %v4187_v19 }
 0x368   : > { %2714 = vmatpush1.bf16.msra.mxu1 %v4185_v20 }
 0x369   : > { %2715 = vmatprep.subr.bf16.mxu1 %v4190_v21 }
 0x36c   : > { %2716 = vmatpush1.bf16.msra.mxu1 %v4188_v22 }
 0x36d   : > { %2717 = vmatprep.subr.bf16.mxu1 %v4193_v23 }
 0x370   : > { %2718 = vmatpush1.bf16.msra.mxu1 %v4191_v24 }
 0x371   : > { %2719 = vmatprep.subr.bf16.mxu1 %v4196_v25 }
 0x374   : > { %2720 = vmatpush1.bf16.msra.mxu1 %v4194_v26  ;;  %v4278_v26 = vld [vmem:[%s4596_s19 + $0x40] sm:$0xff] }
 0x375   : > { %2721 = vmatprep.subr.bf16.mxu1 %v4199_v27 }
 0x378   : > { %2722 = vmatpush1.bf16.msra.mxu1 %v4197_v28  ;;  %v4279_v28 = vld [vmem:[%s4596_s19 + $0x50] sm:$0xff] }
 0x3fd   : > { %v1967_v32 = vpop.f32.mrb[32].mxu1 }
 0x3fe   : > { %v1968_v33 = vadd.f32 %v1967_v32, %v5292_v30  ;;  %v1969_v34 = vpop.f32.mrb[33].mxu1  ;;  %v4280_v32 = vld [vmem:[%s4596_s19 + $0x48] sm:$0xff] }
 0x3ff   : > { %v1970_v42 = vadd.f32 %v1969_v34, %v5295_v31  ;;  %v1971_v43 = vpop.f32.mrb[34].mxu1  ;;  %v4281_v34 = vld [vmem:[%s4596_s19 + $0x58] sm:$0xff] }
 0x400   : > { %v2046_v35 = vmax.f32 %v1968_v33, 0.0  ;;  %v1972_v36 = vadd.f32 %v1971_v43, %v5292_v30  ;;  %v1973_v37 = vpop.f32.mrb[35].mxu1 }
 0x401   : > { %v2047_v38 = vmax.f32 %v1970_v42, 0.0  ;;  %v1974_v39 = vadd.f32 %v1973_v37, %v5295_v31 }
 0x402   : > { %v2048_v40 = vmax.f32 %v1972_v36, 0.0  ;;  %v2078_v45 = vadd.f32 %v4270_v44, %v2046_v35 }
 0x403   : > { %v2049_v41 = vmax.f32 %v1974_v39, 0.0  ;;  %v2079_v49 = vadd.f32 %v4272_v48, %v2047_v38 }
 0x404   : > { %v2080_v47 = vadd.f32 %v4271_v46, %v2048_v40 }
 0x405   : > { %v2081_v51 = vadd.f32 %v4273_v50, %v2049_v41  ;;  %v1977_v52 = vpop.f32.mrb[36].mxu1  ;;  %v4282_v50 = vld [vmem:[%s4596_s19 + $0x60] sm:$0xff] }
 0x406   : > { %v2110_v53 = vpack.c.bf16 %v2080_v47, %v2078_v45  ;;  %v1978_v54 = vadd.f32 %v1977_v52, %v5292_v30  ;;  %v1979_v55 = vpop.f32.mrb[37].mxu1  ;;  %v4283_v52 = vld [vmem:[%s4596_s19 + $0x70] sm:$0xff] }
 0x407   : > { %v1980_v56 = vadd.f32 %v1979_v55, %v5295_v31  ;;  %v1981_v57 = vpop.f32.mrb[38].mxu1  ;;  %v2111_v1 = vpack.c.bf16 %v2081_v51, %v2079_v49 }
 0x408   : > { %v2050_v2 = vmax.f32 %v1978_v54, 0.0  ;;  %v1982_v58 = vadd.f32 %v1981_v57, %v5292_v30  ;;  %v1983_v59 = vpop.f32.mrb[39].mxu1  ;;  %v4284_v54 = vld [vmem:[%s4596_s19 + $0x68] sm:$0xff] }
 0x409   : > { %v2051_v60 = vmax.f32 %v1980_v56, 0.0  ;;  %v1984_v61 = vadd.f32 %v1983_v59, %v5295_v31  ;;  %2362 = vmatprep.mubr.bf16.mxu0 %v2111_v1  ;;  %v4285_v56 = vld [vmem:[%s4596_s19 + $0x78] sm:$0xff] }
 0x40a   : > { %v2052_v62 = vmax.f32 %v1982_v58, 0.0  ;;  %2363 = vmatmul.mubr.bf16.vlgmr.msra.gmra.mrb[64].mxu0 %v2110_v53  ;;  %v2082_v3 = vadd.f32 %v4274_v0, %v2050_v2 }
 0x40b   : > { %v2053_v63 = vmax.f32 %v1984_v61, 0.0  ;;  %v2083_v7 = vadd.f32 %v4276_v6, %v2051_v60 }
 0x40c   : > { %v2084_v5 = vadd.f32 %v4275_v4, %v2052_v62 }
 0x40d   : > { %v2085_v18 = vadd.f32 %v4277_v17, %v2053_v63  ;;  %v1987_v8 = vpop.f32.mrb[40].mxu1  ;;  %v4286_v17 = vld [vmem:[%s4596_s19 + $0x80] sm:$0xff] }
 0x40e   : > { %v1988_v9 = vadd.f32 %v1987_v8, %v5292_v30  ;;  %v1989_v10 = vpop.f32.mrb[41].mxu1  ;;  %v2112_v11 = vpack.c.bf16 %v2084_v5, %v2082_v3  ;;  %v4287_v8 = vld [vmem:[%s4596_s19 + $0x90] sm:$0xff] }
 0x40f   : > { %v1990_v12 = vadd.f32 %v1989_v10, %v5295_v31  ;;  %v1991_v13 = vpop.f32.mrb[42].mxu1  ;;  %v2113_v15 = vpack.c.bf16 %v2085_v18, %v2083_v7  ;;  %v4288_v10 = vld [vmem:[%s4596_s19 + $0x88] sm:$0xff] }
 0x410   : > { %v2054_v19 = vmax.f32 %v1988_v9, 0.0  ;;  %v1992_v20 = vadd.f32 %v1991_v13, %v5292_v30  ;;  %v1993_v21 = vpop.f32.mrb[43].mxu1 }
 0x411   : > { %v2055_v22 = vmax.f32 %v1990_v12, 0.0  ;;  %v1994_v23 = vadd.f32 %v1993_v21, %v5295_v31  ;;  %2372 = vmatprep.mubr.bf16.mxu0 %v2113_v15  ;;  %v4289_v12 = vld [vmem:[%s4596_s19 + $0x98] sm:$0xff] }
 0x412   : > { %v2056_v24 = vmax.f32 %v1992_v20, 0.0  ;;  %2373 = vmatmul.mubr.bf16.gmra.mrb[68].mxu0 %v2112_v11  ;;  %v2086_v27 = vadd.f32 %v4278_v26, %v2054_v19 }
 0x413   : > { %v2057_v25 = vmax.f32 %v1994_v23, 0.0  ;;  %v2087_v33 = vadd.f32 %v4280_v32, %v2055_v22 }
 0x414   : > { %v2088_v29 = vadd.f32 %v4279_v28, %v2056_v24 }
 0x415   : > { %v2089_v42 = vadd.f32 %v4281_v34, %v2057_v25  ;;  %v1997_v43 = vpop.f32.mrb[44].mxu1  ;;  %v4290_v34 = vld [vmem:[%s4596_s19 + $0xa0] sm:$0xff] }
 0x416   : > { %v1998_v35 = vadd.f32 %v1997_v43, %v5292_v30  ;;  %v1999_v36 = vpop.f32.mrb[45].mxu1  ;;  %v2114_v37 = vpack.c.bf16 %v2088_v29, %v2086_v27  ;;  %v4291_v43 = vld [vmem:[%s4596_s19 + $0xb0] sm:$0xff] }
 0x417   : > { %v2000_v38 = vadd.f32 %v1999_v36, %v5295_v31  ;;  %v2001_v39 = vpop.f32.mrb[46].mxu1  ;;  %v2115_v40 = vpack.c.bf16 %v2089_v42, %v2087_v33  ;;  %v4292_v36 = vld [vmem:[%s4596_s19 + $0xa8] sm:$0xff] }
 0x418   : > { %v2058_v41 = vmax.f32 %v1998_v35, 0.0  ;;  %v2002_v44 = vadd.f32 %v2001_v39, %v5292_v30  ;;  %v2003_v45 = vpop.f32.mrb[47].mxu1 }
 0x419   : > { %v2059_v46 = vmax.f32 %v2000_v38, 0.0  ;;  %v2004_v47 = vadd.f32 %v2003_v45, %v5295_v31  ;;  %2382 = vmatprep.mubr.bf16.mxu0 %v2115_v40  ;;  %v4293_v38 = vld [vmem:[%s4596_s19 + $0xb8] sm:$0xff] }
 0x41a   : > { %v2060_v48 = vmax.f32 %v2002_v44, 0.0  ;;  %2383 = vmatmul.mubr.bf16.gmra.mrb[72].mxu0 %v2114_v37  ;;  %v2090_v51 = vadd.f32 %v4282_v50, %v2058_v41 }
 0x41b   : > { %v2061_v49 = vmax.f32 %v2004_v47, 0.0  ;;  %v2091_v55 = vadd.f32 %v4284_v54, %v2059_v46 }
 0x41c   : > { %v2092_v53 = vadd.f32 %v4283_v52, %v2060_v48 }
 0x41d   : > { %v2093_v57 = vadd.f32 %v4285_v56, %v2061_v49  ;;  %v2007_v1 = vpop.f32.mrb[48].mxu1  ;;  %v4294_v56 = vld [vmem:[%s4596_s19 + $0xc0] sm:$0xff] }
 0x41e   : > { %v2008_v2 = vadd.f32 %v2007_v1, %v5292_v30  ;;  %v2009_v58 = vpop.f32.mrb[49].mxu1  ;;  %v2116_v59 = vpack.c.bf16 %v2092_v53, %v2090_v51  ;;  %v4295_v1 = vld [vmem:[%s4596_s19 + $0xd0] sm:$0xff] }
 0x41f   : > { %v2010_v60 = vadd.f32 %v2009_v58, %v5295_v31  ;;  %v2011_v61 = vpop.f32.mrb[50].mxu1  ;;  %v2117_v62 = vpack.c.bf16 %v2093_v57, %v2091_v55  ;;  %v4296_v58 = vld [vmem:[%s4596_s19 + $0xc8] sm:$0xff] }
 0x420   : > { %v2062_v63 = vmax.f32 %v2008_v2, 0.0  ;;  %v2012_v0 = vadd.f32 %v2011_v61, %v5292_v30  ;;  %v2013_v3 = vpop.f32.mrb[51].mxu1 }
 0x421   : > { %v2063_v4 = vmax.f32 %v2010_v60, 0.0  ;;  %v2014_v5 = vadd.f32 %v2013_v3, %v5295_v31  ;;  %2392 = vmatprep.mubr.bf16.mxu0 %v2117_v62  ;;  %v4297_v60 = vld [vmem:[%s4596_s19 + $0xd8] sm:$0xff] }
 0x422   : > { %v2064_v6 = vmax.f32 %v2012_v0, 0.0  ;;  %2393 = vmatmul.mubr.bf16.gmra.mrb[76].mxu0 %v2116_v59  ;;  %v2094_v18 = vadd.f32 %v4286_v17, %v2062_v63 }
 0x423   : > { %v2065_v7 = vmax.f32 %v2014_v5, 0.0  ;;  %v2095_v11 = vadd.f32 %v4288_v10, %v2063_v4 }
 0x424   : > { %v2096_v9 = vadd.f32 %v4287_v8, %v2064_v6 }
 0x425   : > { %v2097_v13 = vadd.f32 %v4289_v12, %v2065_v7  ;;  %v2017_v15 = vpop.f32.mrb[52].mxu1  ;;  %v4298_v12 = vld [vmem:[%s4596_s19 + $0xe0] sm:$0xff] }
 0x426   : > { %v2018_v19 = vadd.f32 %v2017_v15, %v5292_v30  ;;  %v2019_v20 = vpop.f32.mrb[53].mxu1  ;;  %v2118_v21 = vpack.c.bf16 %v2096_v9, %v2094_v18  ;;  %v4299_v15 = vld [vmem:[%s4596_s19 + $0xf0] sm:$0xff] }
 0x427   : > { %v2020_v22 = vadd.f32 %v2019_v20, %v5295_v31  ;;  %v2021_v23 = vpop.f32.mrb[54].mxu1  ;;  %v2119_v24 = vpack.c.bf16 %v2097_v13, %v2095_v11  ;;  %v4300_v20 = vld [vmem:[%s4596_s19 + $0xe8] sm:$0xff] }
 0x428   : > { %v2066_v25 = vmax.f32 %v2018_v19, 0.0  ;;  %v2022_v26 = vadd.f32 %v2021_v23, %v5292_v30  ;;  %v2023_v27 = vpop.f32.mrb[55].mxu1 }
 0x429   : > { %v2067_v28 = vmax.f32 %v2020_v22, 0.0  ;;  %v2024_v29 = vadd.f32 %v2023_v27, %v5295_v31  ;;  %2402 = vmatprep.mubr.bf16.mxu0 %v2119_v24  ;;  %v4301_v22 = vld [vmem:[%s4596_s19 + $0xf8] sm:$0xff]  ;;  %s5578_s19 = sld [smem:[#allocation11_spill]] }
 0x42a   : > { %v2068_v32 = vmax.f32 %v2022_v26, 0.0  ;;  %2403 = vmatmul.mubr.bf16.gmra.mrb[80].mxu0 %v2118_v21  ;;  %v2098_v42 = vadd.f32 %v4290_v34, %v2066_v25  ;;  %v4205_v26 = vld [vmem:[%s5553_s11 + $0xf4] ss:$8 sps:$4 sm:$0xff]   ;;  %v4203_v27 = vld [vmem:[%s5553_s11 + $0xf0] ss:$8 sps:$4 sm:$0xff]  }
 0x42b   : > { %v2069_v33 = vmax.f32 %v2024_v29, 0.0  ;;  %v2099_v37 = vadd.f32 %v4292_v36, %v2067_v28  ;;  %v4206_v28 = vld [vmem:[#allocation2] ss:$8 sps:$4 sm:$0xff]   ;;  %v4208_v29 = vld [vmem:[#allocation2 + $0x4] ss:$8 sps:$4 sm:$0xff]  }
 0x42c   : > { %v2100_v35 = vadd.f32 %v4291_v43, %v2068_v32  ;;  %v4211_v32 = vld [vmem:[#allocation2 + $0x14] ss:$8 sps:$4 sm:$0xff]   ;;  %3060 = vmatprep.subr.bf16.mxu0 %v4208_v29  ;;  %v4214_v34 = vld [vmem:[#allocation2 + $0x24] ss:$8 sps:$4 sm:$0xff]  }
 0x42d   : > { %v2101_v39 = vadd.f32 %v4293_v38, %v2069_v33  ;;  %v2027_v40 = vpop.f32.mrb[56].mxu1  ;;  %3061 = vmatpush1.bf16.msra.mxu0 %v4206_v28  ;;  %v4209_v33 = vld [vmem:[#allocation2 + $0x10] ss:$8 sps:$4 sm:$0xff]   ;;  %v4217_v43 = vld [vmem:[#allocation2 + $0x34] ss:$8 sps:$4 sm:$0xff]  }
 0x42e   : > { %v2028_v41 = vadd.f32 %v2027_v40, %v5292_v30  ;;  %v2029_v44 = vpop.f32.mrb[57].mxu1  ;;  %v2120_v45 = vpack.c.bf16 %v2100_v35, %v2098_v42  ;;  %3062 = vmatprep.subr.bf16.mxu0 %v4211_v32  ;;  %v4212_v42 = vld [vmem:[#allocation2 + $0x20] ss:$8 sps:$4 sm:$0xff]   ;;  %v4215_v35 = vld [vmem:[#allocation2 + $0x30] ss:$8 sps:$4 sm:$0xff]  }
 0x42f   : > { %v2030_v46 = vadd.f32 %v2029_v44, %v5295_v31  ;;  %v2031_v47 = vpop.f32.mrb[58].mxu1  ;;  %v2121_v48 = vpack.c.bf16 %v2101_v39, %v2099_v37  ;;  %v4220_v36 = vld [vmem:[#allocation2 + $0x44] ss:$8 sps:$4 sm:$0xff]   ;;  %v4218_v37 = vld [vmem:[#allocation2 + $0x40] ss:$8 sps:$4 sm:$0xff]   ;;  %s5506_s21 = scalar_lea.vmem %s5578_s19, %s3576_s1 }
 0x430   : > { %v2070_v49 = vmax.f32 %v2028_v41, 0.0  ;;  %v2032_v50 = vadd.f32 %v2031_v47, %v5292_v30  ;;  %v2033_v51 = vpop.f32.mrb[59].mxu1  ;;  %v4223_v38 = vld [vmem:[#allocation2 + $0x54] ss:$8 sps:$4 sm:$0xff]   ;;  %v4221_v39 = vld [vmem:[#allocation2 + $0x50] ss:$8 sps:$4 sm:$0xff]  }
 0x431   : > { %v2071_v52 = vmax.f32 %v2030_v46, 0.0  ;;  %v2034_v53 = vadd.f32 %v2033_v51, %v5295_v31  ;;  %2412 = vmatprep.mubr.bf16.mxu0 %v2121_v48  ;;  %3063 = vmatpush1.bf16.msra.mxu0 %v4209_v33  ;;  %v4226_v40 = vld [vmem:[#allocation2 + $0x64] ss:$8 sps:$4 sm:$0xff]   ;;  %v4224_v41 = vld [vmem:[#allocation2 + $0x60] ss:$8 sps:$4 sm:$0xff]  }
 0x432   : > { %v2072_v54 = vmax.f32 %v2032_v50, 0.0  ;;  %2413 = vmatmul.mubr.bf16.gmra.mrb[84].mxu0 %v2120_v45  ;;  %v2102_v57 = vadd.f32 %v4294_v56, %v2070_v49  ;;  %3064 = vmatprep.subr.bf16.mxu0 %v4214_v34  ;;  %v4229_v44 = vld [vmem:[#allocation2 + $0x74] ss:$8 sps:$4 sm:$0xff]   ;;  %v4227_v45 = vld [vmem:[#allocation2 + $0x70] ss:$8 sps:$4 sm:$0xff]  }
 0x433   : > { %v2073_v55 = vmax.f32 %v2034_v53, 0.0  ;;  %v2103_v59 = vadd.f32 %v4296_v58, %v2071_v52  ;;  %v4232_v46 = vld [vmem:[#allocation2 + $0x84] ss:$8 sps:$4 sm:$0xff]   ;;  %v4230_v47 = vld [vmem:[#allocation2 + $0x80] ss:$8 sps:$4 sm:$0xff]  }
 0x434   : > { %v2104_v2 = vadd.f32 %v4295_v1, %v2072_v54  ;;  %v4235_v48 = vld [vmem:[#allocation2 + $0x94] ss:$8 sps:$4 sm:$0xff]   ;;  %v4233_v49 = vld [vmem:[#allocation2 + $0x90] ss:$8 sps:$4 sm:$0xff]   ;;  %v4238_v50 = vld [vmem:[#allocation2 + $0xa4] ss:$8 sps:$4 sm:$0xff]  }
 0x435   : > { %v2105_v61 = vadd.f32 %v4297_v60, %v2073_v55  ;;  %v2037_v62 = vpop.f32.mrb[60].mxu1  ;;  %3065 = vmatpush1.bf16.msra.mxu0 %v4212_v42  ;;  %v4236_v51 = vld [vmem:[#allocation2 + $0xa0] ss:$8 sps:$4 sm:$0xff]   ;;  %v4241_v52 = vld [vmem:[#allocation2 + $0xb4] ss:$8 sps:$4 sm:$0xff]  }
 0x436   : > { %v2038_v63 = vadd.f32 %v2037_v62, %v5292_v30  ;;  %v2039_v0 = vpop.f32.mrb[61].mxu1  ;;  %v2122_v3 = vpack.c.bf16 %v2104_v2, %v2102_v57  ;;  %3066 = vmatprep.subr.bf16.mxu0 %v4217_v43  ;;  %v4239_v53 = vld [vmem:[#allocation2 + $0xb0] ss:$8 sps:$4 sm:$0xff]   ;;  %v4244_v54 = vld [vmem:[#allocation2 + $0xc4] ss:$8 sps:$4 sm:$0xff]  }
 0x437   : > { %v2040_v4 = vadd.f32 %v2039_v0, %v5295_v31  ;;  %v2041_v5 = vpop.f32.mrb[62].mxu1  ;;  %v2123_v6 = vpack.c.bf16 %v2105_v61, %v2103_v59  ;;  %v4242_v55 = vld [vmem:[#allocation2 + $0xc0] ss:$8 sps:$4 sm:$0xff]   ;;  %v4247_v56 = vld [vmem:[#allocation2 + $0xd4] ss:$8 sps:$4 sm:$0xff]  }
 0x438   : > { %v2074_v7 = vmax.f32 %v2038_v63, 0.0  ;;  %v2042_v17 = vadd.f32 %v2041_v5, %v5292_v30  ;;  %v2043_v18 = vpop.f32.mrb[63].mxu1  ;;  %v4202_v30 = vld [vmem:[%s5553_s11 + $0xe4] ss:$8 sps:$4 sm:$0xff]   ;;  %v4245_v57 = vld [vmem:[#allocation2 + $0xd0] ss:$8 sps:$4 sm:$0xff]  }
 0x439   : > { %v2075_v8 = vmax.f32 %v2040_v4, 0.0  ;;  %v2044_v9 = vadd.f32 %v2043_v18, %v5295_v31  ;;  %2422 = vmatprep.mubr.bf16.mxu0 %v2123_v6  ;;  %v4200_v31 = vld [vmem:[%s5553_s11 + $0xe0] ss:$8 sps:$4 sm:$0xff]   ;;  %2723 = vmatprep.subr.bf16.mxu1 %v4202_v30 }
 0x43a   : > { %v2076_v10 = vmax.f32 %v2042_v17, 0.0  ;;  %2423 = vmatmul.mubr.bf16.gmra.mrb[88].mxu0 %v2122_v3  ;;  %v2106_v13 = vadd.f32 %v4298_v12, %v2074_v7  ;;  %2724 = vmatpush1.bf16.msra.mxu1 %v4200_v31  ;;  %v2158_v1 = vld [vmem:[%s5552_s10] sm:$0x3] }
 0x43b   : > { %v2077_v11 = vmax.f32 %v2044_v9, 0.0  ;;  %v2107_v21 = vadd.f32 %v4300_v20, %v2075_v8  ;;  %2725 = vmatprep.subr.bf16.mxu1 %v4205_v26  ;;  %3067 = vmatpush1.bf16.msra.mxu0 %v4215_v35  ;;  %v5377_v2 = vrot.slane %v2158_v1, %v4873_v14  ;;  %v5380_v58 = vrot.slane %v2158_v1, %v4878_v16 }
 0x43c   : > { %v2108_v19 = vadd.f32 %v4299_v15, %v2076_v10  ;;  %3068 = vmatprep.subr.bf16.mxu0 %v4220_v36 }
 0x43d   : > { %v2109_v23 = vadd.f32 %v4301_v22, %v2077_v11 }
 0x43e   : > { %v2124_v24 = vpack.c.bf16 %v2108_v19, %v2106_v13  ;;  %2726 = vmatpush1.bf16.msra.mxu1 %v4203_v27 }
 0x43f   : > { %v2125_v25 = vpack.c.bf16 %v2109_v23, %v2107_v21  ;;  %3069 = vmatpush1.bf16.msra.mxu0 %v4218_v37 }
 0x440   : > { %3070 = vmatprep.subr.bf16.mxu0 %v4223_v38 }
 0x441   : > { %2432 = vmatprep.mubr.bf16.mxu0 %v2125_v25 }
 0x442   : > { %2433 = vmatmul.mubr.bf16.gmra.mrb[92].mxu0 %v2124_v24 }
 0x443   : > { %3071 = vmatpush1.bf16.msra.mxu0 %v4221_v39 }
 0x444   : > { %3072 = vmatprep.subr.bf16.mxu0 %v4226_v40 }
 0x447   : > { %3073 = vmatpush1.bf16.msra.mxu0 %v4224_v41 }
 0x448   : > { %3074 = vmatprep.subr.bf16.mxu0 %v4229_v44 }
 0x44b   : > { %3075 = vmatpush1.bf16.msra.mxu0 %v4227_v45 }
 0x44c   : > { %3076 = vmatprep.subr.bf16.mxu0 %v4232_v46 }
 0x44f   : > { %3077 = vmatpush1.bf16.msra.mxu0 %v4230_v47 }
 0x450   : > { %3078 = vmatprep.subr.bf16.mxu0 %v4235_v48 }
 0x453   : > { %3079 = vmatpush1.bf16.msra.mxu0 %v4233_v49 }
 0x454   : > { %3080 = vmatprep.subr.bf16.mxu0 %v4238_v50 }
 0x457   : > { %3081 = vmatpush1.bf16.msra.mxu0 %v4236_v51 }
 0x458   : > { %3082 = vmatprep.subr.bf16.mxu0 %v4241_v52 }
 0x45b   : > { %3083 = vmatpush1.bf16.msra.mxu0 %v4239_v53 }
 0x45c   : > { %3084 = vmatprep.subr.bf16.mxu0 %v4244_v54 }
 0x45f   : > { %3085 = vmatpush1.bf16.msra.mxu0 %v4242_v55 }
 0x460   : > { %3086 = vmatprep.subr.bf16.mxu0 %v4247_v56 }
 0x463   : > { %3087 = vmatpush1.bf16.msra.mxu0 %v4245_v57 }
 0x4dd   : > { %v2364_v59 = vpop.f32.mrb[64].mxu0 }
 0x4de   : > { %v2365_v60 = vadd.f32 %v2364_v59, %v5377_v2  ;;  %v2366_v61 = vpop.f32.mrb[65].mxu0 }
 0x4df   : > { %v2367_v62 = vadd.f32 %v2366_v61, %v5380_v58  ;;  %v2368_v63 = vpop.f32.mrb[66].mxu0 }
 0x4e0   : > { %v2369_v0 = vadd.f32 %v2368_v63, %v5377_v2  ;;  %v2370_v3 = vpop.f32.mrb[67].mxu0  ;;  %v2443_v5 = vmax.f32 %v2365_v60, 0.0 }
 0x4e1   : > { %v2371_v4 = vadd.f32 %v2370_v3, %v5380_v58  ;;  %v2444_v7 = vmax.f32 %v2367_v62, 0.0 }
 0x4e2   : > { %v2445_v6 = vmax.f32 %v2369_v0, 0.0 }
 0x4e3   : > { %v2446_v17 = vmax.f32 %v2371_v4, 0.0 }
 0x4e4   : > { %v2475_v18 = vpack.c.bf16 %v2445_v6, %v2443_v5 }
 0x4e5   : > { %v2476_v8 = vpack.c.bf16 %v2446_v17, %v2444_v7  ;;  %v2374_v9 = vpop.f32.mrb[68].mxu0 }
 0x4e6   : > { %v2375_v10 = vadd.f32 %v2374_v9, %v5377_v2  ;;  %v2376_v11 = vpop.f32.mrb[69].mxu0 }
 0x4e7   : > { %v2377_v12 = vadd.f32 %v2376_v11, %v5380_v58  ;;  %v2378_v13 = vpop.f32.mrb[70].mxu0  ;;  %2727 = vmatprep.mubr.bf16.mxu1 %v2476_v8 }
 0x4e8   : > { %v2379_v15 = vadd.f32 %v2378_v13, %v5377_v2  ;;  %v2380_v19 = vpop.f32.mrb[71].mxu0  ;;  %2728 = vmatmul.mubr.bf16.vlgmr.msra.gmra.mrb[64].mxu1 %v2475_v18  ;;  %v2447_v21 = vmax.f32 %v2375_v10, 0.0 }
 0x4e9   : > { %v2381_v20 = vadd.f32 %v2380_v19, %v5380_v58  ;;  %v2448_v23 = vmax.f32 %v2377_v12, 0.0 }
 0x4ea   : > { %v2449_v22 = vmax.f32 %v2379_v15, 0.0 }
 0x4eb   : > { %v2450_v24 = vmax.f32 %v2381_v20, 0.0 }
 0x4ec   : > { %v2477_v25 = vpack.c.bf16 %v2449_v22, %v2447_v21 }
 0x4ed   : > { %v2478_v30 = vpack.c.bf16 %v2450_v24, %v2448_v23  ;;  %v2384_v31 = vpop.f32.mrb[72].mxu0 }
 0x4ee   : > { %v2385_v26 = vadd.f32 %v2384_v31, %v5377_v2  ;;  %v2386_v27 = vpop.f32.mrb[73].mxu0 }
 0x4ef   : > { %v2387_v28 = vadd.f32 %v2386_v27, %v5380_v58  ;;  %v2388_v29 = vpop.f32.mrb[74].mxu0  ;;  %2737 = vmatprep.mubr.bf16.mxu1 %v2478_v30 }
 0x4f0   : > { %v2389_v32 = vadd.f32 %v2388_v29, %v5377_v2  ;;  %v2390_v33 = vpop.f32.mrb[75].mxu0  ;;  %2738 = vmatmul.mubr.bf16.gmra.mrb[68].mxu1 %v2477_v25  ;;  %v2451_v42 = vmax.f32 %v2385_v26, 0.0 }
 0x4f1   : > { %v2391_v34 = vadd.f32 %v2390_v33, %v5380_v58  ;;  %v2452_v35 = vmax.f32 %v2387_v28, 0.0 }
 0x4f2   : > { %v2453_v43 = vmax.f32 %v2389_v32, 0.0 }
 0x4f3   : > { %v2454_v36 = vmax.f32 %v2391_v34, 0.0 }
 0x4f4   : > { %v2479_v37 = vpack.c.bf16 %v2453_v43, %v2451_v42 }
 0x4f5   : > { %v2480_v38 = vpack.c.bf16 %v2454_v36, %v2452_v35  ;;  %v2394_v39 = vpop.f32.mrb[76].mxu0 }
 0x4f6   : > { %v2395_v40 = vadd.f32 %v2394_v39, %v5377_v2  ;;  %v2396_v41 = vpop.f32.mrb[77].mxu0 }
 0x4f7   : > { %v2397_v44 = vadd.f32 %v2396_v41, %v5380_v58  ;;  %v2398_v45 = vpop.f32.mrb[78].mxu0  ;;  %2747 = vmatprep.mubr.bf16.mxu1 %v2480_v38 }
 0x4f8   : > { %v2399_v46 = vadd.f32 %v2398_v45, %v5377_v2  ;;  %v2400_v47 = vpop.f32.mrb[79].mxu0  ;;  %2748 = vmatmul.mubr.bf16.gmra.mrb[72].mxu1 %v2479_v37  ;;  %v2455_v49 = vmax.f32 %v2395_v40, 0.0 }
 0x4f9   : > { %v2401_v48 = vadd.f32 %v2400_v47, %v5380_v58  ;;  %v2456_v51 = vmax.f32 %v2397_v44, 0.0 }
 0x4fa   : > { %v2457_v50 = vmax.f32 %v2399_v46, 0.0 }
 0x4fb   : > { %v2458_v52 = vmax.f32 %v2401_v48, 0.0 }
 0x4fc   : > { %v2481_v53 = vpack.c.bf16 %v2457_v50, %v2455_v49 }
 0x4fd   : > { %v2482_v54 = vpack.c.bf16 %v2458_v52, %v2456_v51  ;;  %v2404_v55 = vpop.f32.mrb[80].mxu0  ;;  %v4250_v51 = vld [vmem:[#allocation2 + $0xe4] ss:$8 sps:$4 sm:$0xff]   ;;  %v4248_v52 = vld [vmem:[#allocation2 + $0xe0] ss:$8 sps:$4 sm:$0xff]  }
 0x4fe   : > { %v2405_v56 = vadd.f32 %v2404_v55, %v5377_v2  ;;  %v2406_v57 = vpop.f32.mrb[81].mxu0  ;;  %3088 = vmatprep.subr.bf16.mxu0 %v4250_v51  ;;  %v4255_v55 = vld [vmem:[#allocation4] sm:$0xff]  }
 0x4ff   : > { %v2407_v1 = vadd.f32 %v2406_v57, %v5380_v58  ;;  %v2408_v59 = vpop.f32.mrb[82].mxu0  ;;  %2757 = vmatprep.mubr.bf16.mxu1 %v2482_v54  ;;  %3089 = vmatpush1.bf16.msra.mxu0 %v4248_v52  ;;  %v4251_v54 = vld [vmem:[#allocation2 + $0xf0] ss:$8 sps:$4 sm:$0xff]  }
 0x500   : > { %v2409_v60 = vadd.f32 %v2408_v59, %v5377_v2  ;;  %v2410_v61 = vpop.f32.mrb[83].mxu0  ;;  %2758 = vmatmul.mubr.bf16.gmra.mrb[76].mxu1 %v2481_v53  ;;  %v2459_v63 = vmax.f32 %v2405_v56, 0.0  ;;  %v4253_v53 = vld [vmem:[#allocation2 + $0xf4] ss:$8 sps:$4 sm:$0xff]   ;;  %v4256_v56 = vld [vmem:[#allocation4 + $0x48] sm:$0xff]  }
 0x501   : > { %v2411_v62 = vadd.f32 %v2410_v61, %v5380_v58  ;;  %v2460_v3 = vmax.f32 %v2407_v1, 0.0  ;;  %3090 = vmatprep.subr.bf16.mxu0 %v4253_v53  ;;  %v4258_v57 = vld [vmem:[#allocation4 + $0x50] sm:$0xff]   ;;  %v4260_v59 = vld [vmem:[#allocation4 + $0x58] sm:$0xff]   ;;  %v4262_v61 = vld [vmem:[#allocation4 + $0x60] sm:$0xff]  }
 0x502   : > { %v2461_v0 = vmax.f32 %v2409_v60, 0.0  ;;  %v4259_v1 = vld [vmem:[#allocation4 + $0x10] sm:$0xff]   ;;  %v4261_v60 = vld [vmem:[#allocation4 + $0x18] sm:$0xff]  }
 0x503   : > { %v2462_v4 = vmax.f32 %v2411_v62, 0.0  ;;  %3091 = vmatpush1.bf16.msra.mxu0 %v4251_v54  ;;  %v4263_v62 = vld [vmem:[#allocation4 + $0x20] sm:$0xff]  }
 0x504   : > { %v2483_v5 = vpack.c.bf16 %v2461_v0, %v2459_v63  ;;  %v4264_v63 = vld [vmem:[#allocation4 + $0x68] sm:$0xff]  }
 0x505   : > { %v2484_v6 = vpack.c.bf16 %v2462_v4, %v2460_v3  ;;  %v2414_v7 = vpop.f32.mrb[84].mxu0  ;;  %v4265_v0 = vld [vmem:[#allocation4 + $0x28] sm:$0xff]   ;;  %v4266_v3 = vld [vmem:[#allocation4 + $0x70] sm:$0xff]  }
 0x506   : > { %v2415_v17 = vadd.f32 %v2414_v7, %v5377_v2  ;;  %v2416_v18 = vpop.f32.mrb[85].mxu0  ;;  %v4267_v4 = vld [vmem:[#allocation4 + $0x30] sm:$0xff]  }
 0x507   : > { %v2417_v8 = vadd.f32 %v2416_v18, %v5380_v58  ;;  %v2418_v9 = vpop.f32.mrb[86].mxu0  ;;  %2767 = vmatprep.mubr.bf16.mxu1 %v2484_v6 }
 0x508   : > { %v2419_v10 = vadd.f32 %v2418_v9, %v5377_v2  ;;  %v2420_v11 = vpop.f32.mrb[87].mxu0  ;;  %2768 = vmatmul.mubr.bf16.gmra.mrb[80].mxu1 %v2483_v5  ;;  %v2463_v13 = vmax.f32 %v2415_v17, 0.0  ;;  %v2523_v5 = vld [vmem:[%s5554_s12] sm:$0x3] }
 0x509   : > { %v2421_v12 = vadd.f32 %v2420_v11, %v5380_v58  ;;  %v2464_v19 = vmax.f32 %v2417_v8, 0.0  ;;  %v5418_v6 = vrot.slane %v2523_v5, %v4873_v14  ;;  %v5421_v7 = vrot.slane %v2523_v5, %v4878_v16 }
 0x50a   : > { %v2465_v15 = vmax.f32 %v2419_v10, 0.0 }
 0x50b   : > { %v2466_v20 = vmax.f32 %v2421_v12, 0.0 }
 0x50c   : > { %v2485_v21 = vpack.c.bf16 %v2465_v15, %v2463_v13 }
 0x50d   : > { %v2486_v22 = vpack.c.bf16 %v2466_v20, %v2464_v19  ;;  %v2424_v23 = vpop.f32.mrb[88].mxu0 }
 0x50e   : > { %v2425_v24 = vadd.f32 %v2424_v23, %v5377_v2  ;;  %v2426_v25 = vpop.f32.mrb[89].mxu0 }
 0x50f   : > { %v2427_v30 = vadd.f32 %v2426_v25, %v5380_v58  ;;  %v2428_v31 = vpop.f32.mrb[90].mxu0  ;;  %2777 = vmatprep.mubr.bf16.mxu1 %v2486_v22 }
 0x510   : > { %v2429_v26 = vadd.f32 %v2428_v31, %v5377_v2  ;;  %v2430_v27 = vpop.f32.mrb[91].mxu0  ;;  %2778 = vmatmul.mubr.bf16.gmra.mrb[84].mxu1 %v2485_v21  ;;  %v2467_v29 = vmax.f32 %v2425_v24, 0.0 }
 0x511   : > { %v2431_v28 = vadd.f32 %v2430_v27, %v5380_v58  ;;  %v2468_v33 = vmax.f32 %v2427_v30, 0.0 }
 0x512   : > { %v2469_v32 = vmax.f32 %v2429_v26, 0.0 }
 0x513   : > { %v2470_v34 = vmax.f32 %v2431_v28, 0.0 }
 0x514   : > { %v2487_v42 = vpack.c.bf16 %v2469_v32, %v2467_v29 }
 0x515   : > { %v2488_v43 = vpack.c.bf16 %v2470_v34, %v2468_v33  ;;  %v2434_v35 = vpop.f32.mrb[92].mxu0 }
 0x516   : > { %v2435_v36 = vadd.f32 %v2434_v35, %v5377_v2  ;;  %v2436_v37 = vpop.f32.mrb[93].mxu0 }
 0x517   : > { %v2437_v38 = vadd.f32 %v2436_v37, %v5380_v58  ;;  %v2438_v39 = vpop.f32.mrb[94].mxu0  ;;  %2787 = vmatprep.mubr.bf16.mxu1 %v2488_v43 }
 0x518   : > { %v2439_v40 = vadd.f32 %v2438_v39, %v5377_v2  ;;  %v2440_v41 = vpop.f32.mrb[95].mxu0  ;;  %2788 = vmatmul.mubr.bf16.gmra.mrb[88].mxu1 %v2487_v42  ;;  %v2471_v45 = vmax.f32 %v2435_v36, 0.0  ;;  %v4254_v2 = vld [vmem:[#allocation4 + $0x40] sm:$0xff]  }
 0x519   : > { %v2441_v44 = vadd.f32 %v2440_v41, %v5380_v58  ;;  %v2472_v47 = vmax.f32 %v2437_v38, 0.0  ;;  %3821 = vmatprep.subr.bf16.mxu1 %v4254_v2  ;;  %v4257_v58 = vld [vmem:[#allocation4 + $0x8] sm:$0xff]  }
 0x51a   : > { %v2473_v46 = vmax.f32 %v2439_v40, 0.0  ;;  %3822 = vmatpush3.bf16.msra.mxu1 %v4255_v55 }
 0x51b   : > { %v2474_v48 = vmax.f32 %v2441_v44, 0.0  ;;  %3823 = vmatprep.subr.bf16.mxu1 %v4256_v56 }
 0x51c   : > { %v2489_v49 = vpack.c.bf16 %v2473_v46, %v2471_v45 }
 0x51d   : > { %v2490_v50 = vpack.c.bf16 %v2474_v48, %v2472_v47 }
 0x51e   : > { %3824 = vmatpush3.bf16.msra.mxu1 %v4257_v58 }
 0x51f   : > { %2797 = vmatprep.mubr.bf16.mxu1 %v2490_v50  ;;  %3825 = vmatprep.subr.bf16.mxu1 %v4258_v57 }
 0x520   : > { %2798 = vmatmul.mubr.bf16.gmra.mrb[92].mxu1 %v2489_v49 }
 0x522   : > { %3826 = vmatpush3.bf16.msra.mxu1 %v4259_v1 }
 0x523   : > { %3827 = vmatprep.subr.bf16.mxu1 %v4260_v59 }
 0x526   : > { %3828 = vmatpush3.bf16.msra.mxu1 %v4261_v60 }
 0x527   : > { %3829 = vmatprep.subr.bf16.mxu1 %v4262_v61 }
 0x52a   : > { %3830 = vmatpush3.bf16.msra.mxu1 %v4263_v62 }
 0x52b   : > { %3831 = vmatprep.subr.bf16.mxu1 %v4264_v63 }
 0x52e   : > { %3832 = vmatpush3.bf16.msra.mxu1 %v4265_v0 }
 0x52f   : > { %3833 = vmatprep.subr.bf16.mxu1 %v4266_v3 }
 0x532   : > { %3834 = vmatpush3.bf16.msra.mxu1 %v4267_v4 }
 0x5bb   : > { %v2729_v17 = vpop.f32.mrb[64].mxu1 }
 0x5bc   : > { %v2730_v18 = vadd.f32 %v2729_v17, %v5418_v6  ;;  %v2731_v8 = vpop.f32.mrb[65].mxu1 }
 0x5bd   : > { %v2732_v9 = vadd.f32 %v2731_v8, %v5421_v7  ;;  %v2733_v10 = vpop.f32.mrb[66].mxu1 }
 0x5be   : > { %v2734_v11 = vadd.f32 %v2733_v10, %v5418_v6  ;;  %v2735_v12 = vpop.f32.mrb[67].mxu1  ;;  %v2808_v15 = vmax.f32 %v2730_v18, 0.0 }
 0x5bf   : > { %v2736_v13 = vadd.f32 %v2735_v12, %v5421_v7  ;;  %v2809_v20 = vmax.f32 %v2732_v9, 0.0 }
 0x5c0   : > { %v2810_v19 = vmax.f32 %v2734_v11, 0.0 }
 0x5c1   : > { %v2811_v21 = vmax.f32 %v2736_v13, 0.0 }
 0x5c2   : > { %v2840_v22 = vpack.c.bf16 %v2810_v19, %v2808_v15 }
 0x5c3   : > { %v2841_v23 = vpack.c.bf16 %v2811_v21, %v2809_v20  ;;  %v2739_v24 = vpop.f32.mrb[68].mxu1 }
 0x5c4   : > { %v2740_v25 = vadd.f32 %v2739_v24, %v5418_v6  ;;  %v2741_v30 = vpop.f32.mrb[69].mxu1 }
 0x5c5   : > { %v2742_v31 = vadd.f32 %v2741_v30, %v5421_v7  ;;  %v2743_v26 = vpop.f32.mrb[70].mxu1  ;;  %3092 = vmatprep.mubr.bf16.mxu0 %v2841_v23 }
 0x5c6   : > { %v2744_v27 = vadd.f32 %v2743_v26, %v5418_v6  ;;  %v2745_v28 = vpop.f32.mrb[71].mxu1  ;;  %3093 = vmatmul.mubr.bf16.vlgmr.msra.gmra.mrb[96].mxu0 %v2840_v22  ;;  %v2812_v32 = vmax.f32 %v2740_v25, 0.0 }
 0x5c7   : > { %v2746_v29 = vadd.f32 %v2745_v28, %v5421_v7  ;;  %v2813_v34 = vmax.f32 %v2742_v31, 0.0 }
 0x5c8   : > { %v2814_v33 = vmax.f32 %v2744_v27, 0.0 }
 0x5c9   : > { %v2815_v42 = vmax.f32 %v2746_v29, 0.0 }
 0x5ca   : > { %v2842_v43 = vpack.c.bf16 %v2814_v33, %v2812_v32 }
 0x5cb   : > { %v2843_v35 = vpack.c.bf16 %v2815_v42, %v2813_v34  ;;  %v2749_v36 = vpop.f32.mrb[72].mxu1 }
 0x5cc   : > { %v2750_v37 = vadd.f32 %v2749_v36, %v5418_v6  ;;  %v2751_v38 = vpop.f32.mrb[73].mxu1 }
 0x5cd   : > { %v2752_v39 = vadd.f32 %v2751_v38, %v5421_v7  ;;  %v2753_v40 = vpop.f32.mrb[74].mxu1  ;;  %3102 = vmatprep.mubr.bf16.mxu0 %v2843_v35 }
 0x5ce   : > { %v2754_v41 = vadd.f32 %v2753_v40, %v5418_v6  ;;  %v2755_v44 = vpop.f32.mrb[75].mxu1  ;;  %3103 = vmatmul.mubr.bf16.gmra.mrb[100].mxu0 %v2842_v43  ;;  %v2816_v46 = vmax.f32 %v2750_v37, 0.0 }
 0x5cf   : > { %v2756_v45 = vadd.f32 %v2755_v44, %v5421_v7  ;;  %v2817_v48 = vmax.f32 %v2752_v39, 0.0 }
 0x5d0   : > { %v2818_v47 = vmax.f32 %v2754_v41, 0.0 }
 0x5d1   : > { %v2819_v49 = vmax.f32 %v2756_v45, 0.0 }
 0x5d2   : > { %v2844_v50 = vpack.c.bf16 %v2818_v47, %v2816_v46 }
 0x5d3   : > { %v2845_v51 = vpack.c.bf16 %v2819_v49, %v2817_v48  ;;  %v2759_v52 = vpop.f32.mrb[76].mxu1 }
 0x5d4   : > { %v2760_v53 = vadd.f32 %v2759_v52, %v5418_v6  ;;  %v2761_v54 = vpop.f32.mrb[77].mxu1 }
 0x5d5   : > { %v2762_v2 = vadd.f32 %v2761_v54, %v5421_v7  ;;  %v2763_v55 = vpop.f32.mrb[78].mxu1  ;;  %3112 = vmatprep.mubr.bf16.mxu0 %v2845_v51 }
 0x5d6   : > { %v2764_v56 = vadd.f32 %v2763_v55, %v5418_v6  ;;  %v2765_v58 = vpop.f32.mrb[79].mxu1  ;;  %3113 = vmatmul.mubr.bf16.gmra.mrb[104].mxu0 %v2844_v50  ;;  %v2820_v1 = vmax.f32 %v2760_v53, 0.0 }
 0x5d7   : > { %v2766_v57 = vadd.f32 %v2765_v58, %v5421_v7  ;;  %v2821_v60 = vmax.f32 %v2762_v2, 0.0 }
 0x5d8   : > { %v2822_v59 = vmax.f32 %v2764_v56, 0.0 }
 0x5d9   : > { %v2823_v61 = vmax.f32 %v2766_v57, 0.0 }
 0x5da   : > { %v2846_v62 = vpack.c.bf16 %v2822_v59, %v2820_v1 }
 0x5db   : > { %v2847_v63 = vpack.c.bf16 %v2823_v61, %v2821_v60  ;;  %v2769_v0 = vpop.f32.mrb[80].mxu1  ;;  %v4268_v60 = vld [vmem:[#allocation4 + $0x78] sm:$0xff]  }
 0x5dc   : > { %v2770_v3 = vadd.f32 %v2769_v0, %v5418_v6  ;;  %v2771_v4 = vpop.f32.mrb[81].mxu1  ;;  %v4269_v61 = vld [vmem:[#allocation4 + $0x38] sm:$0xff]   ;;  %3835 = vmatprep.subr.bf16.mxu1 %v4268_v60 }
 0x5dd   : > { %v2772_v5 = vadd.f32 %v2771_v4, %v5421_v7  ;;  %v2773_v17 = vpop.f32.mrb[82].mxu1  ;;  %3122 = vmatprep.mubr.bf16.mxu0 %v2847_v63  ;;  %3836 = vmatpush3.bf16.msra.mxu1 %v4269_v61 }
 0x5de   : > { %v2774_v18 = vadd.f32 %v2773_v17, %v5418_v6  ;;  %v2775_v8 = vpop.f32.mrb[83].mxu1  ;;  %3123 = vmatmul.mubr.bf16.gmra.mrb[108].mxu0 %v2846_v62  ;;  %v2824_v10 = vmax.f32 %v2770_v3, 0.0 }
 0x5df   : > { %v2776_v9 = vadd.f32 %v2775_v8, %v5421_v7  ;;  %v2825_v12 = vmax.f32 %v2772_v5, 0.0 }
 0x5e0   : > { %v2826_v11 = vmax.f32 %v2774_v18, 0.0 }
 0x5e1   : > { %v2827_v13 = vmax.f32 %v2776_v9, 0.0 }
 0x5e2   : > { %v2848_v15 = vpack.c.bf16 %v2826_v11, %v2824_v10 }
 0x5e3   : > { %v2849_v19 = vpack.c.bf16 %v2827_v13, %v2825_v12  ;;  %v2779_v20 = vpop.f32.mrb[84].mxu1 }
 0x5e4   : > { %v2780_v21 = vadd.f32 %v2779_v20, %v5418_v6  ;;  %v2781_v22 = vpop.f32.mrb[85].mxu1 }
 0x5e5   : > { %v2782_v23 = vadd.f32 %v2781_v22, %v5421_v7  ;;  %v2783_v24 = vpop.f32.mrb[86].mxu1  ;;  %3132 = vmatprep.mubr.bf16.mxu0 %v2849_v19 }
 0x5e6   : > { %v2784_v25 = vadd.f32 %v2783_v24, %v5418_v6  ;;  %v2785_v30 = vpop.f32.mrb[87].mxu1  ;;  %3133 = vmatmul.mubr.bf16.gmra.mrb[112].mxu0 %v2848_v15  ;;  %v2828_v26 = vmax.f32 %v2780_v21, 0.0 }
 0x5e7   : > { %v2786_v31 = vadd.f32 %v2785_v30, %v5421_v7  ;;  %v2829_v28 = vmax.f32 %v2782_v23, 0.0 }
 0x5e8   : > { %v2830_v27 = vmax.f32 %v2784_v25, 0.0 }
 0x5e9   : > { %v2831_v29 = vmax.f32 %v2786_v31, 0.0 }
 0x5ea   : > { %v2850_v32 = vpack.c.bf16 %v2830_v27, %v2828_v26 }
 0x5eb   : > { %v2851_v33 = vpack.c.bf16 %v2831_v29, %v2829_v28  ;;  %v2789_v34 = vpop.f32.mrb[88].mxu1 }
 0x5ec   : > { %v2790_v42 = vadd.f32 %v2789_v34, %v5418_v6  ;;  %v2791_v43 = vpop.f32.mrb[89].mxu1 }
 0x5ed   : > { %v2792_v35 = vadd.f32 %v2791_v43, %v5421_v7  ;;  %v2793_v36 = vpop.f32.mrb[90].mxu1  ;;  %3142 = vmatprep.mubr.bf16.mxu0 %v2851_v33 }
 0x5ee   : > { %v2794_v37 = vadd.f32 %v2793_v36, %v5418_v6  ;;  %v2795_v38 = vpop.f32.mrb[91].mxu1  ;;  %3143 = vmatmul.mubr.bf16.gmra.mrb[116].mxu0 %v2850_v32  ;;  %v2832_v40 = vmax.f32 %v2790_v42, 0.0 }
 0x5ef   : > { %v2796_v39 = vadd.f32 %v2795_v38, %v5421_v7  ;;  %v2833_v44 = vmax.f32 %v2792_v35, 0.0 }
 0x5f0   : > { %v2834_v41 = vmax.f32 %v2794_v37, 0.0 }
 0x5f1   : > { %v2835_v45 = vmax.f32 %v2796_v39, 0.0 }
 0x5f2   : > { %v2852_v46 = vpack.c.bf16 %v2834_v41, %v2832_v40 }
 0x5f3   : > { %v2853_v47 = vpack.c.bf16 %v2835_v45, %v2833_v44  ;;  %v2799_v48 = vpop.f32.mrb[92].mxu1 }
 0x5f4   : > { %v2800_v49 = vadd.f32 %v2799_v48, %v5418_v6  ;;  %v2801_v50 = vpop.f32.mrb[93].mxu1 }
 0x5f5   : > { %v2802_v51 = vadd.f32 %v2801_v50, %v5421_v7  ;;  %v2803_v52 = vpop.f32.mrb[94].mxu1  ;;  %3152 = vmatprep.mubr.bf16.mxu0 %v2853_v47 }
 0x5f6   : > { %v2804_v53 = vadd.f32 %v2803_v52, %v5418_v6  ;;  %v2805_v54 = vpop.f32.mrb[95].mxu1  ;;  %3153 = vmatmul.mubr.bf16.gmra.mrb[120].mxu0 %v2852_v46  ;;  %v2836_v55 = vmax.f32 %v2800_v49, 0.0  ;;  %v2888_v6 = vld [vmem:[%s5556_s14] sm:$0x3] }
 0x5f7   : > { %v2806_v2 = vadd.f32 %v2805_v54, %v5421_v7  ;;  %v2837_v58 = vmax.f32 %v2802_v51, 0.0  ;;  %v5459_v62 = vrot.slane %v2888_v6, %v4873_v14  ;;  %v5462_v7 = vrot.slane %v2888_v6, %v4878_v16 }
 0x5f8   : > { %v2838_v56 = vmax.f32 %v2804_v53, 0.0 }
 0x5f9   : > { %v2839_v57 = vmax.f32 %v2806_v2, 0.0 }
 0x5fa   : > { %v2854_v1 = vpack.c.bf16 %v2838_v56, %v2836_v55 }
 0x5fb   : > { %v2855_v59 = vpack.c.bf16 %v2839_v57, %v2837_v58 }
 0x5fd   : > { %3162 = vmatprep.mubr.bf16.mxu0 %v2855_v59 }
 0x5fe   : > { %3163 = vmatmul.mubr.bf16.gmra.mrb[124].mxu0 %v2854_v1 }
 0x699   : > { %v3094_v63 = vpop.f32.mrb[96].mxu0 }
 0x69a   : > { %v3095_v0 = vadd.f32 %v3094_v63, %v5459_v62  ;;  %v3096_v3 = vpop.f32.mrb[97].mxu0 }
 0x69b   : > { %v3097_v4 = vadd.f32 %v3096_v3, %v5462_v7  ;;  %v3098_v5 = vpop.f32.mrb[98].mxu0 }
 0x69c   : > { %v3099_v17 = vadd.f32 %v3098_v5, %v5459_v62  ;;  %v3100_v18 = vpop.f32.mrb[99].mxu0  ;;  %v3173_v9 = vmax.f32 %v3095_v0, 0.0 }
 0x69d   : > { %v3101_v8 = vadd.f32 %v3100_v18, %v5462_v7  ;;  %v3174_v11 = vmax.f32 %v3097_v4, 0.0 }
 0x69e   : > { %v3175_v10 = vmax.f32 %v3099_v17, 0.0 }
 0x69f   : > { %v3176_v14 = vmax.f32 %v3101_v8, 0.0 }
 0x6a0   : > { %v3205_v12 = vpack.c.bf16 %v3175_v10, %v3173_v9 }
 0x6a1   : > { %v3206_v13 = vpack.c.bf16 %v3176_v14, %v3174_v11  ;;  %v3104_v16 = vpop.f32.mrb[100].mxu0 }
 0x6a2   : > { %v3105_v15 = vadd.f32 %v3104_v16, %v5459_v62  ;;  %v3106_v19 = vpop.f32.mrb[101].mxu0 }
 0x6a3   : > { %v3107_v20 = vadd.f32 %v3106_v19, %v5462_v7  ;;  %v3108_v21 = vpop.f32.mrb[102].mxu0  ;;  %3388 = vmatprep.mubr.bf16.mxu1 %v3206_v13 }
 0x6a4   : > { %v3109_v22 = vadd.f32 %v3108_v21, %v5459_v62  ;;  %v3110_v23 = vpop.f32.mrb[103].mxu0  ;;  %3389 = vmatmul.mubr.bf16.vlgmr.msra.gmra.mrb[96].mxu1 %v3205_v12  ;;  %v3177_v25 = vmax.f32 %v3105_v15, 0.0 }
 0x6a5   : > { %v3111_v24 = vadd.f32 %v3110_v23, %v5462_v7  ;;  %v3178_v31 = vmax.f32 %v3107_v20, 0.0 }
 0x6a6   : > { %v3179_v30 = vmax.f32 %v3109_v22, 0.0 }
 0x6a7   : > { %v3180_v26 = vmax.f32 %v3111_v24, 0.0 }
 0x6a8   : > { %v3207_v27 = vpack.c.bf16 %v3179_v30, %v3177_v25 }
 0x6a9   : > { %v3208_v28 = vpack.c.bf16 %v3180_v26, %v3178_v31  ;;  %v3114_v29 = vpop.f32.mrb[104].mxu0 }
 0x6aa   : > { %v3115_v32 = vadd.f32 %v3114_v29, %v5459_v62  ;;  %v3116_v33 = vpop.f32.mrb[105].mxu0 }
 0x6ab   : > { %v3117_v34 = vadd.f32 %v3116_v33, %v5462_v7  ;;  %v3118_v42 = vpop.f32.mrb[106].mxu0  ;;  %3396 = vmatprep.mubr.bf16.mxu1 %v3208_v28 }
 0x6ac   : > { %v3119_v43 = vadd.f32 %v3118_v42, %v5459_v62  ;;  %v3120_v35 = vpop.f32.mrb[107].mxu0  ;;  %3397 = vmatmul.mubr.bf16.gmra.mrb[100].mxu1 %v3207_v27  ;;  %v3181_v37 = vmax.f32 %v3115_v32, 0.0 }
 0x6ad   : > { %v3121_v36 = vadd.f32 %v3120_v35, %v5462_v7  ;;  %v3182_v39 = vmax.f32 %v3117_v34, 0.0 }
 0x6ae   : > { %v3183_v38 = vmax.f32 %v3119_v43, 0.0 }
 0x6af   : > { %v3184_v40 = vmax.f32 %v3121_v36, 0.0 }
 0x6b0   : > { %v3209_v41 = vpack.c.bf16 %v3183_v38, %v3181_v37 }
 0x6b1   : > { %v3210_v44 = vpack.c.bf16 %v3184_v40, %v3182_v39  ;;  %v3124_v45 = vpop.f32.mrb[108].mxu0 }
 0x6b2   : > { %v3125_v46 = vadd.f32 %v3124_v45, %v5459_v62  ;;  %v3126_v47 = vpop.f32.mrb[109].mxu0 }
 0x6b3   : > { %v3127_v48 = vadd.f32 %v3126_v47, %v5462_v7  ;;  %v3128_v49 = vpop.f32.mrb[110].mxu0  ;;  %3404 = vmatprep.mubr.bf16.mxu1 %v3210_v44 }
 0x6b4   : > { %v3129_v50 = vadd.f32 %v3128_v49, %v5459_v62  ;;  %v3130_v51 = vpop.f32.mrb[111].mxu0  ;;  %3405 = vmatmul.mubr.bf16.gmra.mrb[104].mxu1 %v3209_v41  ;;  %v3185_v53 = vmax.f32 %v3125_v46, 0.0 }
 0x6b5   : > { %v3131_v52 = vadd.f32 %v3130_v51, %v5462_v7  ;;  %v3186_v2 = vmax.f32 %v3127_v48, 0.0 }
 0x6b6   : > { %v3187_v54 = vmax.f32 %v3129_v50, 0.0 }
 0x6b7   : > { %v3188_v55 = vmax.f32 %v3131_v52, 0.0 }
 0x6b8   : > { %v3211_v56 = vpack.c.bf16 %v3187_v54, %v3185_v53  ;;  %v5499_v54 = vld [vmem:[%s5577_s18] ss:$0 sm:$0xff] }
 0x6b9   : > { %v3212_v58 = vpack.c.bf16 %v3188_v55, %v3186_v2  ;;  %v3134_v57 = vpop.f32.mrb[112].mxu0 }
 0x6ba   : > { %v3135_v1 = vadd.f32 %v3134_v57, %v5459_v62  ;;  %v3136_v59 = vpop.f32.mrb[113].mxu0 }
 0x6bb   : > { %v3137_v60 = vadd.f32 %v3136_v59, %v5462_v7  ;;  %v3138_v61 = vpop.f32.mrb[114].mxu0  ;;  %3412 = vmatprep.mubr.bf16.mxu1 %v3212_v58 }
 0x6bc   : > { %v3139_v6 = vadd.f32 %v3138_v61, %v5459_v62  ;;  %v3140_v63 = vpop.f32.mrb[115].mxu0  ;;  %3413 = vmatmul.mubr.bf16.gmra.mrb[108].mxu1 %v3211_v56  ;;  %v3189_v3 = vmax.f32 %v3135_v1, 0.0 }
 0x6bd   : > { %v3141_v0 = vadd.f32 %v3140_v63, %v5462_v7  ;;  %v3190_v5 = vmax.f32 %v3137_v60, 0.0 }
 0x6be   : > { %v3191_v4 = vmax.f32 %v3139_v6, 0.0 }
 0x6bf   : > { %v3192_v17 = vmax.f32 %v3141_v0, 0.0 }
 0x6c0   : > { %v3213_v18 = vpack.c.bf16 %v3191_v4, %v3189_v3 }
 0x6c1   : > { %v3214_v8 = vpack.c.bf16 %v3192_v17, %v3190_v5  ;;  %v3144_v9 = vpop.f32.mrb[116].mxu0 }
 0x6c2   : > { %v3145_v10 = vadd.f32 %v3144_v9, %v5459_v62  ;;  %v3146_v11 = vpop.f32.mrb[117].mxu0 }
 0x6c3   : > { %v3147_v14 = vadd.f32 %v3146_v11, %v5462_v7  ;;  %v3148_v12 = vpop.f32.mrb[118].mxu0  ;;  %3420 = vmatprep.mubr.bf16.mxu1 %v3214_v8 }
 0x6c4   : > { %v3149_v13 = vadd.f32 %v3148_v12, %v5459_v62  ;;  %v3150_v16 = vpop.f32.mrb[119].mxu0  ;;  %3421 = vmatmul.mubr.bf16.gmra.mrb[112].mxu1 %v3213_v18  ;;  %v3193_v19 = vmax.f32 %v3145_v10, 0.0 }
 0x6c5   : > { %v3151_v15 = vadd.f32 %v3150_v16, %v5462_v7  ;;  %v3194_v21 = vmax.f32 %v3147_v14, 0.0 }
 0x6c6   : > { %v3195_v20 = vmax.f32 %v3149_v13, 0.0 }
 0x6c7   : > { %v3196_v22 = vmax.f32 %v3151_v15, 0.0 }
 0x6c8   : > { %v3215_v23 = vpack.c.bf16 %v3195_v20, %v3193_v19 }
 0x6c9   : > { %v3216_v24 = vpack.c.bf16 %v3196_v22, %v3194_v21  ;;  %v3154_v25 = vpop.f32.mrb[120].mxu0 }
 0x6ca   : > { %v3155_v30 = vadd.f32 %v3154_v25, %v5459_v62  ;;  %v3156_v31 = vpop.f32.mrb[121].mxu0 }
 0x6cb   : > { %v3157_v26 = vadd.f32 %v3156_v31, %v5462_v7  ;;  %v3158_v27 = vpop.f32.mrb[122].mxu0  ;;  %3428 = vmatprep.mubr.bf16.mxu1 %v3216_v24 }
 0x6cc   : > { %v3159_v28 = vadd.f32 %v3158_v27, %v5459_v62  ;;  %v3160_v29 = vpop.f32.mrb[123].mxu0  ;;  %3429 = vmatmul.mubr.bf16.gmra.mrb[116].mxu1 %v3215_v23  ;;  %v3197_v33 = vmax.f32 %v3155_v30, 0.0 }
 0x6cd   : > { %v3161_v32 = vadd.f32 %v3160_v29, %v5462_v7  ;;  %v3198_v42 = vmax.f32 %v3157_v26, 0.0 }
 0x6ce   : > { %v3199_v34 = vmax.f32 %v3159_v28, 0.0 }
 0x6cf   : > { %v3200_v43 = vmax.f32 %v3161_v32, 0.0 }
 0x6d0   : > { %v3217_v35 = vpack.c.bf16 %v3199_v34, %v3197_v33 }
 0x6d1   : > { %v3218_v36 = vpack.c.bf16 %v3200_v43, %v3198_v42  ;;  %v3164_v37 = vpop.f32.mrb[124].mxu0 }
 0x6d2   : > { %v3165_v38 = vadd.f32 %v3164_v37, %v5459_v62  ;;  %v3166_v39 = vpop.f32.mrb[125].mxu0 }
 0x6d3   : > { %v3167_v40 = vadd.f32 %v3166_v39, %v5462_v7  ;;  %v3168_v41 = vpop.f32.mrb[126].mxu0  ;;  %3436 = vmatprep.mubr.bf16.mxu1 %v3218_v36 }
 0x6d4   : > { %v3169_v44 = vadd.f32 %v3168_v41, %v5459_v62  ;;  %v3170_v45 = vpop.f32.mrb[127].mxu0  ;;  %3437 = vmatmul.mubr.bf16.gmra.mrb[120].mxu1 %v3217_v35  ;;  %v3201_v47 = vmax.f32 %v3165_v38, 0.0 }
 0x6d5   : > { %v3171_v46 = vadd.f32 %v3170_v45, %v5462_v7  ;;  %v3202_v49 = vmax.f32 %v3167_v40, 0.0 }
 0x6d6   : > { %v3203_v48 = vmax.f32 %v3169_v44, 0.0 }
 0x6d7   : > { %v3204_v50 = vmax.f32 %v3171_v46, 0.0 }
 0x6d8   : > { %v3219_v51 = vpack.c.bf16 %v3203_v48, %v3201_v47 }
 0x6d9   : > { %v3220_v52 = vpack.c.bf16 %v3204_v50, %v3202_v49 }
 0x6db   : > { %3444 = vmatprep.mubr.bf16.mxu1 %v3220_v52 }
 0x6dc   : > { %3445 = vmatmul.mubr.bf16.gmra.mrb[124].mxu1 %v3219_v51 }
 0x777   : > { %v3837_v53 = vpop.f32.mrb[96].mxu1 }
 0x778   : > { %v3838_v2 = vpop.f32.mrb[97].mxu1 }
 0x779   : > { %v3839_v62 = vadd.f32 %v3838_v2, %v3837_v53  ;;  %v3840_v55 = vpop.f32.mrb[98].mxu1 }
 0x77a   : > { %v3841_v56 = vpop.f32.mrb[99].mxu1 }
 0x77b   : > { %v3391_v7 = vadd.f32 %v3839_v62, %v5499_v54  ;;  %v3842_v58 = vadd.f32 %v3841_v56, %v3840_v55 }
 0x77d   : > { %v3453_v57 = vmax.f32 %v3391_v7, 0.0  ;;  %v3394_v1 = vadd.f32 %v3842_v58, %v5499_v54 }
 0x77f   : > { %3469 = vst [vmem:[%s5506_s21] sm:$0xff] %v3453_v57  ;;  %v3454_v59 = vmax.f32 %v3394_v1, 0.0  ;;  %v3843_v60 = vpop.f32.mrb[100].mxu1 }
 0x780   : > { %v3844_v61 = vpop.f32.mrb[101].mxu1 }
 0x781   : > { %3470 = vst [vmem:[%s5506_s21 + $0x8] sm:$0xff] %v3454_v59  ;;  %v3845_v6 = vadd.f32 %v3844_v61, %v3843_v60  ;;  %v3846_v63 = vpop.f32.mrb[102].mxu1 }
 0x782   : > { %v3847_v0 = vpop.f32.mrb[103].mxu1 }
 0x783   : > { %v3399_v3 = vadd.f32 %v3845_v6, %v5499_v54  ;;  %v3848_v4 = vadd.f32 %v3847_v0, %v3846_v63 }
 0x785   : > { %v3455_v5 = vmax.f32 %v3399_v3, 0.0  ;;  %v3402_v17 = vadd.f32 %v3848_v4, %v5499_v54 }
 0x787   : > { %3471 = vst [vmem:[%s5506_s21 + $0x10] sm:$0xff] %v3455_v5  ;;  %v3456_v18 = vmax.f32 %v3402_v17, 0.0  ;;  %v3849_v8 = vpop.f32.mrb[104].mxu1 }
 0x788   : > { %v3850_v9 = vpop.f32.mrb[105].mxu1 }
 0x789   : > { %3472 = vst [vmem:[%s5506_s21 + $0x18] sm:$0xff] %v3456_v18  ;;  %v3851_v10 = vadd.f32 %v3850_v9, %v3849_v8  ;;  %v3852_v11 = vpop.f32.mrb[106].mxu1 }
 0x78a   : > { %v3853_v14 = vpop.f32.mrb[107].mxu1 }
 0x78b   : > { %v3407_v12 = vadd.f32 %v3851_v10, %v5499_v54  ;;  %v3854_v13 = vadd.f32 %v3853_v14, %v3852_v11 }
 0x78d   : > { %v3457_v16 = vmax.f32 %v3407_v12, 0.0  ;;  %v3410_v15 = vadd.f32 %v3854_v13, %v5499_v54 }
 0x78f   : > { %3473 = vst [vmem:[%s5506_s21 + $0x20] sm:$0xff] %v3457_v16  ;;  %v3458_v19 = vmax.f32 %v3410_v15, 0.0  ;;  %v3855_v20 = vpop.f32.mrb[108].mxu1 }
 0x790   : > { %v3856_v21 = vpop.f32.mrb[109].mxu1 }
 0x791   : > { %3474 = vst [vmem:[%s5506_s21 + $0x28] sm:$0xff] %v3458_v19  ;;  %v3857_v22 = vadd.f32 %v3856_v21, %v3855_v20  ;;  %v3858_v23 = vpop.f32.mrb[110].mxu1 }
 0x792   : > { %v3859_v24 = vpop.f32.mrb[111].mxu1 }
 0x793   : > { %v3415_v25 = vadd.f32 %v3857_v22, %v5499_v54  ;;  %v3860_v30 = vadd.f32 %v3859_v24, %v3858_v23 }
 0x795   : > { %v3459_v31 = vmax.f32 %v3415_v25, 0.0  ;;  %v3418_v26 = vadd.f32 %v3860_v30, %v5499_v54 }
 0x797   : > { %3475 = vst [vmem:[%s5506_s21 + $0x30] sm:$0xff] %v3459_v31  ;;  %v3460_v27 = vmax.f32 %v3418_v26, 0.0  ;;  %v3861_v28 = vpop.f32.mrb[112].mxu1 }
 0x798   : > { %v3862_v29 = vpop.f32.mrb[113].mxu1 }
 0x799   : > { %3476 = vst [vmem:[%s5506_s21 + $0x38] sm:$0xff] %v3460_v27  ;;  %v3863_v32 = vadd.f32 %v3862_v29, %v3861_v28  ;;  %v3864_v33 = vpop.f32.mrb[114].mxu1 }
 0x79a   : > { %v3865_v34 = vpop.f32.mrb[115].mxu1 }
 0x79b   : > { %v3423_v42 = vadd.f32 %v3863_v32, %v5499_v54  ;;  %v3866_v43 = vadd.f32 %v3865_v34, %v3864_v33 }
 0x79d   : > { %v3461_v35 = vmax.f32 %v3423_v42, 0.0  ;;  %v3426_v36 = vadd.f32 %v3866_v43, %v5499_v54 }
 0x79f   : > { %3477 = vst [vmem:[%s5506_s21 + $0x40] sm:$0xff] %v3461_v35  ;;  %v3462_v37 = vmax.f32 %v3426_v36, 0.0  ;;  %v3867_v38 = vpop.f32.mrb[116].mxu1 }
 0x7a0   : > { %v3868_v39 = vpop.f32.mrb[117].mxu1 }
 0x7a1   : > { %3478 = vst [vmem:[%s5506_s21 + $0x48] sm:$0xff] %v3462_v37  ;;  %v3869_v40 = vadd.f32 %v3868_v39, %v3867_v38  ;;  %v3870_v41 = vpop.f32.mrb[118].mxu1 }
 0x7a2   : > { %v3871_v44 = vpop.f32.mrb[119].mxu1 }
 0x7a3   : > { %v3431_v45 = vadd.f32 %v3869_v40, %v5499_v54  ;;  %v3872_v46 = vadd.f32 %v3871_v44, %v3870_v41 }
 0x7a5   : > { %v3463_v47 = vmax.f32 %v3431_v45, 0.0  ;;  %v3434_v48 = vadd.f32 %v3872_v46, %v5499_v54 }
 0x7a7   : > { %3479 = vst [vmem:[%s5506_s21 + $0x50] sm:$0xff] %v3463_v47  ;;  %v3464_v49 = vmax.f32 %v3434_v48, 0.0  ;;  %v3873_v50 = vpop.f32.mrb[120].mxu1 }
 0x7a8   : > { %v3874_v51 = vpop.f32.mrb[121].mxu1 }
 0x7a9   : > { %3480 = vst [vmem:[%s5506_s21 + $0x58] sm:$0xff] %v3464_v49  ;;  %v3875_v52 = vadd.f32 %v3874_v51, %v3873_v50  ;;  %v3876_v53 = vpop.f32.mrb[122].mxu1 }
 0x7aa   : > { %v3877_v2 = vpop.f32.mrb[123].mxu1 }
 0x7ab   : > { %v3439_v62 = vadd.f32 %v3875_v52, %v5499_v54  ;;  %v3878_v55 = vadd.f32 %v3877_v2, %v3876_v53 }
 0x7ad   : > { %v3465_v56 = vmax.f32 %v3439_v62, 0.0  ;;  %v3442_v7 = vadd.f32 %v3878_v55, %v5499_v54 }
 0x7af   : > { %3481 = vst [vmem:[%s5506_s21 + $0x60] sm:$0xff] %v3465_v56  ;;  %v3466_v58 = vmax.f32 %v3442_v7, 0.0  ;;  %v3879_v57 = vpop.f32.mrb[124].mxu1 }
 0x7b0   : > { %v3880_v1 = vpop.f32.mrb[125].mxu1 }
 0x7b1   : > { %3482 = vst [vmem:[%s5506_s21 + $0x68] sm:$0xff] %v3466_v58  ;;  %v3881_v59 = vadd.f32 %v3880_v1, %v3879_v57  ;;  %v3882_v60 = vpop.f32.mrb[126].mxu1 }
 0x7b2   : > { %v3883_v61 = vpop.f32.mrb[127].mxu1 }
 0x7b3   : > { %v3447_v6 = vadd.f32 %v3881_v59, %v5499_v54  ;;  %v3884_v63 = vadd.f32 %v3883_v61, %v3882_v60 }
 0x7b5   : > { %v3467_v0 = vmax.f32 %v3447_v6, 0.0  ;;  %v3450_v3 = vadd.f32 %v3884_v63, %v5499_v54 }
 0x7b7   : > { %3483 = vst [vmem:[%s5506_s21 + $0x70] sm:$0xff] %v3467_v0  ;;  %v3468_v4 = vmax.f32 %v3450_v3, 0.0 }
 0x7b9   : > { %3484 = vst [vmem:[%s5506_s21 + $0x78] sm:$0xff] %v3468_v4 }
 0x7ba PF: > { %s29_s24 = sadd.s32 1, %s4372_s24  }
 0x7bb   : > { %p26_p2 = scmp.ge.s32.totalorder %s29_s24, 4  }
 0x7bd   :  { %28 = sbr.rel (!%p26_p2) target bundleno = 7 (0x7), region = 127 }
 0x7c4   :  { %3507 = vsyncpa [#allocation3], 1 }
 0x7c5   :  { %3509 = vsyncpa [#allocation3 + $0x1], 1 }
 0x7c6   :  { %3510 = vsyncpa [#allocation5], 1 }

</bundles_post_ra>
